<compile_context>
chip_gen: v6e
topology: v6e:2x2x1
jax: 0.10.0
libtpu: 0.0.40
codegen_flags: <defaults>
</compile_context>

<pallas_src>
import functools

import jax
import jax.numpy as jnp
from jax.experimental import pallas as pl
from jax.experimental.pallas import tpu as pltpu


def _cdiv(a, b):
    return -(-a // b)


def _round_up(a, b):
    return _cdiv(a, b) * b


def _avgpool2x2_kernel(x_ref, pw_ref, o_ref, *, precision):
    # x_ref : (Rb, 2kW)   packed row block (k row-pairs per slab row)
    # pw_ref: (2kW, kWo)  constant pooling matrix
    # o_ref : (Rb, kWo)   final pooled rows, lane-dense straight off the MXU
    o_ref[...] = jnp.dot(
        x_ref[...],
        pw_ref[...],
        preferred_element_type=jnp.float32,
        precision=precision,
    ).astype(o_ref.dtype)


def _pick_pack_factor(Rp, Wo):
    """Row-pairs packed per slab row: make the packed output width ~128 lanes (k must divide Rp)."""
    if Wo >= 128 or Rp <= 1:
        return 1
    k_target = min(Rp, _cdiv(128, Wo))
    for k in range(k_target, 0, -1):
        if Rp % k == 0:
            return k
    return 1


def _vmem_targets():
    """(working-set target bytes, vmem_limit_bytes) per TPU generation."""
    kind = ""
    try:
        kind = jax.devices()[0].device_kind.lower()
    except Exception:
        pass
    if "v5" in kind or "v6" in kind:       # 128 MiB physical VMEM
        return 48 << 20, 64 << 20
    if "v7" in kind:                       # 64 MiB physical VMEM
        return 30 << 20, 48 << 20
    return 12 << 20, None                  # unknown chip: stay inside the scoped default


def _pick_row_block(Rpk, row_bytes, fixed_bytes, sub, working_set, min_steps=4):
    """Rows per grid step: sublane-tile multiple, honest VMEM budget, >= min_steps equal-ish blocks."""
    if Rpk <= sub:
        return Rpk                         # single full block (full-dim block shapes are legal)
    avail = max(sub * row_bytes, working_set - fixed_bytes)
    rows_fit = max(sub, (avail // row_bytes) // sub * sub)
    n_steps = max(min_steps, _cdiv(Rpk, rows_fit))
    rb = _round_up(_cdiv(Rpk, n_steps), sub)
    return int(min(rb, rows_fit, Rpk))


def downsample(x, kernel_size=2, stride=2):
    """nn.AvgPool2d(kernel_size=2, stride=2) on an NCHW tensor via a Pallas TPU kernel."""
    assert kernel_size == 2 and stride == 2, "kernel specialised for 2x2 / stride-2 pooling"
    N, C, H, W = x.shape
    assert H >= 2 and W >= 2, "spatial dims must be at least the pooling window"
    # PyTorch floor mode: odd trailing rows / columns are dropped.
    He, We = H - (H % 2), W - (W % 2)
    if (He, We) != (H, W):
        x = x[:, :, :He, :We]
    Ho, Wo = He // 2, We // 2

    # Flatten to a row slab (free reshape), then pack k row-pairs per slab row.  A row pair
    # (2q, 2q+1) never crosses a channel / image boundary because He is even, so packing across
    # those boundaries is safe.
    R = N * C * He                 # input slab rows
    Rp = R // 2                    # row pairs == output slab rows
    k = _pick_pack_factor(Rp, Wo)
    Rpk = Rp // k                  # packed rows
    Kin = 2 * k * We               # packed input lanes
    Kout = k * Wo                  # packed output lanes
    x2 = x.reshape(Rpk, Kin)

    # Constant pooling matrix: input lane i = 2*p*We + m*We + c (pair p, row-in-pair m, column c)
    # feeds output lane j = p*Wo + c//2 with weight 0.25 (exact in bf16 and f32).
    i_lane = jnp.arange(Kin)
    tgt = (i_lane // (2 * We)) * Wo + (i_lane % We) // 2
    pw = jnp.where(tgt[:, None] == jnp.arange(Kout)[None, :], 0.25, 0.0).astype(x.dtype)
    # TODO(synk): for very large W (pw ~ O(W^2) VMEM) a lane-blocked fixed stencil would be needed;
    # not required at these shapes.

    itemsize = jnp.dtype(x.dtype).itemsize
    sub = {4: 8, 2: 16, 1: 32}.get(itemsize, 8)        # sublane tile for this dtype

    # Honest per-row VMEM footprint: double-buffered input + output rows (lane-padded to 128)
    # plus the f32 matmul accumulator; the grid-invariant pooling matrix is double-buffered.
    kin_pad = _round_up(Kin, 128)
    kout_pad = _round_up(Kout, 128)
    row_bytes = 2 * kin_pad * itemsize + 2 * kout_pad * itemsize + kout_pad * 4
    pw_bytes = 2 * _round_up(Kin, sub) * kout_pad * itemsize

    working_set, vmem_limit = _vmem_targets()
    Rb = _pick_row_block(Rpk, row_bytes, pw_bytes + (1 << 20), sub, working_set)
    grid = (_cdiv(Rpk, Rb),)

    # f32 inputs stay (near-)exact through the MXU; bf16 goes in natively with f32 accumulation.
    precision = jax.lax.Precision.HIGHEST if x.dtype == jnp.float32 else None
    kernel = functools.partial(_avgpool2x2_kernel, precision=precision)

    cost = pl.CostEstimate(
        flops=int(2 * Rpk * Kin * Kout),               # actual MXU work of the pooling matmul
        transcendentals=0,
        bytes_accessed=int((Rpk * Kin + Rpk * Kout + Kin * Kout) * itemsize),
    )

    out2 = pl.pallas_call(
        kernel,
        out_shape=jax.ShapeDtypeStruct((Rpk, Kout), x.dtype),
        grid=grid,
        in_specs=[
            pl.BlockSpec((Rb, Kin), lambda i: (i, 0)),     # packed row block of the input slab
            pl.BlockSpec((Kin, Kout), lambda i: (0, 0)),   # grid-invariant pooling matrix
        ],
        out_specs=pl.BlockSpec((Rb, Kout), lambda i: (i, 0)),
        compiler_params=pltpu.CompilerParams(
            dimension_semantics=("parallel",),             # no reduction axis -> megacore shards rows
            vmem_limit_bytes=vmem_limit,
        ),
        cost_estimate=cost,
    )(x2, pw)

    return out2.reshape(N, C, Ho, Wo)


def _ref_avgpool2x2(x):
    N, C, H, W = x.shape
    He, We = H - (H % 2), W - (W % 2)
    xr = x[:, :, :He, :We].reshape(N, C, He // 2, 2, We // 2, 2)
    return xr.mean(axis=(3, 5))


if __name__ == "__main__":
    key = jax.random.PRNGKey(0)

    # Primary case consistent with the module's forward: NCHW, 2x2 / stride-2 average pooling.
    x = jax.random.normal(key, (2, 4, 16, 16), dtype=jnp.float32)
    out = jax.block_until_ready(downsample(x))
    assert out.shape == (2, 4, 8, 8), out.shape
    assert jnp.allclose(out, _ref_avgpool2x2(x), atol=1e-5, rtol=1e-5), "mismatch (primary)"

    # Larger case exercising the multi-block streaming grid.
    x2 = jax.random.normal(jax.random.PRNGKey(1), (4, 8, 32, 64), dtype=jnp.float32)
    out2 = jax.block_until_ready(downsample(x2))
    assert out2.shape == (4, 8, 16, 32), out2.shape
    assert jnp.allclose(out2, _ref_avgpool2x2(x2), atol=1e-5, rtol=1e-5), "mismatch (large)"

    # Odd spatial dims: PyTorch floor mode drops the trailing row / column.
    x3 = jax.random.normal(jax.random.PRNGKey(2), (2, 2, 7, 9), dtype=jnp.float32)
    out3 = jax.block_until_ready(downsample(x3))
    assert out3.shape == (2, 2, 3, 4), out3.shape
    assert jnp.allclose(out3, _ref_avgpool2x2(x3), atol=1e-5, rtol=1e-5), "mismatch (odd dims)"

    print("KERNEL_OK")
</pallas_src>

<mosaic_0001>
module attributes {stable_mosaic.version = 11 : i64} {
  func.func @_avgpool2x2_kernel(%arg0: i32, %arg1: memref<4x512xf32, #tpu.memory_space<vmem>>, %arg2: memref<512x128xf32, #tpu.memory_space<vmem>>, %arg3: memref<4x128xf32, #tpu.memory_space<vmem>>) attributes {dimension_semantics = [#tpu.dimension_semantics<parallel>], iteration_bounds = array<i64: 1>, scalar_prefetch = 0 : i64, scratch_operands = 0 : i64, tpu.core_type = #tpu.core_type<tc>, window_params = [{transform_indices = @transform_0, window_bounds = array<i64: 4, 512>}, {pipeline_mode = #tpu.pipeline_mode<synchronous>, transform_indices = @transform_1, window_bounds = array<i64: 512, 128>}, {transform_indices = @transform_2, window_bounds = array<i64: 4, 128>}]} {
    %c0 = arith.constant 0 : index
    %c0_0 = arith.constant 0 : index
    %0 = vector.load %arg1[%c0, %c0_0] : memref<4x512xf32, #tpu.memory_space<vmem>>, vector<4x512xf32>
    %c0_1 = arith.constant 0 : index
    %c0_2 = arith.constant 0 : index
    %1 = vector.load %arg2[%c0_1, %c0_2] : memref<512x128xf32, #tpu.memory_space<vmem>>, vector<512x128xf32>
    %cst = arith.constant dense<0.000000e+00> : vector<4x128xf32>
    %2 = tpu.matmul %0, %1, %cst {dimension_numbers = #tpu.dot_dimension_numbers<[1], [0], [0], [1], [0, 0, 1, 1], [], []>, precision = #tpu.contract_precision<fp32>} : vector<4x512xf32>, vector<512x128xf32>, vector<4x128xf32> -> vector<4x128xf32>
    %c0_3 = arith.constant 0 : index
    %c0_4 = arith.constant 0 : index
    %3 = vector.load %arg3[%c0_3, %c0_4] : memref<4x128xf32, #tpu.memory_space<vmem>>, vector<4x128xf32>
    tpu.vector_store %arg3[%c0_3, %c0_4], %2 {strides = array<i32>} : memref<4x128xf32, #tpu.memory_space<vmem>>, vector<4x128xf32>,
    return
  }
  func.func @transform_0(%arg0: i32) -> (i32, i32) {
    %c0_i32 = arith.constant 0 : i32
    %c0_i32_0 = arith.constant 0 : i32
    return %arg0, %c0_i32 : i32, i32
  }
  func.func @transform_1(%arg0: i32) -> (i32, i32) {
    %c0_i32 = arith.constant 0 : i32
    %c0_i32_0 = arith.constant 0 : i32
    %c0_i32_1 = arith.constant 0 : i32
    return %c0_i32, %c0_i32_0 : i32, i32
  }
  func.func @transform_2(%arg0: i32) -> (i32, i32) {
    %c0_i32 = arith.constant 0 : i32
    %c0_i32_0 = arith.constant 0 : i32
    return %arg0, %c0_i32 : i32, i32
  }
}

</mosaic_0001>

<bundles_post_ra>
// kernel: tpu_custom_call.1
= control target key start
LH: loop header
LB: loop body
LE: loop exit
PB: predicated region body
PF: predicated region fallthrough
CT: control target
= control target key end

     0   :  { %7 = vsyncpa [#allocation3], 0  ;;  %s3560_s0 = inlined_call_operand.hbm [shape: f32[4,512], index: 0, kind: input, shape index: {}]   ;;  %s3561_s1 = inlined_call_operand.hbm [shape: f32[512,128], index: 1, kind: input, shape index: {}]   ;;  %s3562_s2 = inlined_call_operand.hbm [shape: f32[4,128], index: 2, kind: output, shape index: {}]  }
   0x1   :  { %8 = vsyncpa [#allocation6], 0 }
   0x2   :  { %9 = vsyncpa [#allocation4], 0  ;;  %s2344_s9 = smov [#allocation2]   ;;  %s2345_s11 = smov [#allocation5]  }
   0x3   :  { %s16_s10 = sshll.u32 %s2344_s9, 4  ;;  %s25_s12 = sshll.u32 %s2345_s11, 4  ;;  %s17_s10 = int_to_ptr.vmem [resolvable:$true] %s16_s10  ;;  %s26_s12 = int_to_ptr.vmem [resolvable:$true] %s25_s12 }
   0x4   :  { %s2286_s13 = scalar_lea.vmem %s17_s10, 256  ;;  %p2291_p1 = scmp.lt.s32.totalorder %s17_s10, %s17_s10 }
   0x5   :  { %p2287_p0 = scmp.ne.s32.totalorder %s17_s10, %s2286_s13  ;;  %p2292_p2 = scmp.lt.s32.totalorder %s2286_s13, %s2286_s13 }
   0x7   :  { %p2293_p3 = por %p2292_p2, %p2291_p1 }
   0x9   :  { %p2294_p4 = pnand %p2293_p3, %p2287_p0 }
   0xb   :  { %2297 = shalt.err (!%p2294_p4)
}
   0xc   :  { %19 = dma.hbm_to_vmem [thread:$0]  %s3560_s0, 256, %s17_s10, [#allocation3]  }
   0xd   :  { %s2306_s16 = scalar_lea.vmem %s26_s12, 8192  ;;  %p2311_p6 = scmp.lt.s32.totalorder %s26_s12, %s26_s12 }
   0xe   :  { %p2307_p5 = scmp.ne.s32.totalorder %s26_s12, %s2306_s16  ;;  %p2312_p7 = scmp.lt.s32.totalorder %s2306_s16, %s2306_s16 }
  0x10   :  { %p2313_p8 = por %p2312_p7, %p2311_p6 }
  0x12   :  { %p2314_p9 = pnand %p2313_p8, %p2307_p5 }
  0x14   :  { %2317 = shalt.err (!%p2314_p9)
}
  0x15   :  { %s2346_s17 = smov 128   ;;  %s2347_s18 = smov 8  }
  0x16   :  { %31 = dma.hbm_to_vmem [thread:$0]  %s3561_s1, 8192, %s26_s12, [#allocation6], %s2346_s17, %s2346_s17, %s2347_s18  }
  0x17   :  { %2338 = dma.done.wait [#allocation3], 256  }
  0x18   :  { %2339 = vsyncadd [#allocation3], 4294967040 }
  0x19   :  { %2340 = dma.done.wait [#allocation6], 8192  }
  0x1a   :  { %2341 = vsyncadd [#allocation6], 4294959104  ;;  %v71_v0 = vld [vmem:[#allocation5 + $0xf8] sm:$0xff]  ;;  %v70_v2 = vld [vmem:[#allocation5 + $0xf0] sm:$0xff]  ;;  %s2348_s0 = smov [#allocation7]  }
  0x1b   :  { %v55_v1 = vld [vmem:[#allocation5 + $0x78] sm:$0xff]  ;;  %v2370_v3 = vand.u32 4294901760, %v71_v0  ;;  %v2374_v5 = vand.u32 4294901760, %v70_v2  ;;  %v54_v6 = vld [vmem:[#allocation5 + $0x70] sm:$0xff]  ;;  %v69_v7 = vld [vmem:[#allocation5 + $0xe8] sm:$0xff]  ;;  %s1841_s1 = sshll.u32 %s2348_s0, 4  ;;  %s1842_s1 = int_to_ptr.vmem [resolvable:$true] %s1841_s1 }
  0x1c   :  { %v2372_v4 = vand.u32 4294901760, %v55_v1  ;;  %v53_v8 = vld [vmem:[#allocation5 + $0x68] sm:$0xff]  ;;  %v2376_v9 = vand.u32 4294901760, %v54_v6  ;;  %v2378_v10 = vand.u32 4294901760, %v69_v7  ;;  %v68_v12 = vld [vmem:[#allocation5 + $0xe0] sm:$0xff]  ;;  %v67_v14 = vld [vmem:[#allocation5 + $0xd8] sm:$0xff]  ;;  %p2323_p11 = scmp.lt.s32.totalorder %s1842_s1, %s1842_s1 }
  0x1d   :  { %v2380_v11 = vand.u32 4294901760, %v53_v8  ;;  %v52_v13 = vld [vmem:[#allocation5 + $0x60] sm:$0xff]  ;;  %1851 = vmatprep.subr.mxu0 %v2370_v3  ;;  %v2383_v15 = vand.u32 4294901760, %v68_v12  ;;  %v2387_v17 = vand.u32 4294901760, %v67_v14  ;;  %v2390_v18 = vsub.f32 %v71_v0, %v2370_v3  ;;  %v2392_v19 = vld [vmem:[#allocation5 + $0x58] sm:$0xff]  ;;  %v2394_v20 = vld [vmem:[#allocation5 + $0xd0] sm:$0xff] }
  0x1e   :  { %v2385_v16 = vand.u32 4294901760, %v52_v13  ;;  %v2396_v21 = vld [vmem:[#allocation5 + $0x50] sm:$0xff]  ;;  %1852 = vmatpush3.msra.mxu0 %v2372_v4  ;;  %v2400_v22 = vand.u32 4294901760, %v2392_v19  ;;  %v2403_v23 = vsub.f32 %v55_v1, %v2372_v4  ;;  %v2406_v24 = vand.u32 4294901760, %v2394_v20  ;;  %v2411_v26 = vld [vmem:[#allocation5 + $0xc8] sm:$0xff]  ;;  %v2415_v28 = vld [vmem:[#allocation5 + $0xc0] sm:$0xff] }
  0x1f   :  { %v2409_v25 = vsub.f32 %v70_v2, %v2374_v5  ;;  %v2413_v27 = vld [vmem:[#allocation5 + $0x48] sm:$0xff]  ;;  %1853 = vmatprep.subr.mxu0 %v2374_v5  ;;  %v3576_v29 = vand.u32 4294901760, %v2390_v18  ;;  %v2420_v30 = vand.u32 4294901760, %v2396_v21  ;;  %v2423_v31 = vsub.f32 %v54_v6, %v2376_v9  ;;  %v2437_v37 = vld [vmem:[#allocation5 + $0x40] sm:$0xff]  ;;  %v2461_v46 = vld [vmem:[#allocation5 + $0xb8] sm:$0xff]  ;;  %s2318_s21 = scalar_lea.vmem %s1842_s1, 64 }
  0x20   :  { %v2426_v32 = vand.u32 4294901760, %v2411_v26  ;;  %1854 = vmatpush3.msra.mxu0 %v2376_v9  ;;  %v3574_v33 = vand.u32 4294901760, %v2403_v23  ;;  %v2432_v35 = vsub.f32 %v69_v7, %v2378_v10  ;;  %v2435_v36 = vand.u32 4294901760, %v2413_v27  ;;  %v2471_v51 = vld [vmem:[#allocation5 + $0x38] sm:$0xff]  ;;  %v2478_v56 = vld [vmem:[#allocation5 + $0xb0] sm:$0xff]  ;;  %v2502_v2 = vld [vmem:[#allocation5 + $0xa8] sm:$0xff]  ;;  %p2319_p10 = scmp.ne.s32.totalorder %s1842_s1, %s2318_s21  ;;  %p2324_p12 = scmp.lt.s32.totalorder %s2318_s21, %s2318_s21 }
  0x21   :  { %3700 = vst [vmem:[#allocation11_spill] sm:$0xff] %v2420_v30  ;;  %v3573_v34 = vand.u32 4294901760, %v2409_v25  ;;  %1855 = vmatprep.subr.mxu0 %v2378_v10  ;;  %v338_v38 = vsub.f32 %v2390_v18, %v3576_v29  ;;  %v3571_v39 = vand.u32 4294901760, %v2423_v31  ;;  %v2445_v40 = vsub.f32 %v53_v8, %v2380_v11  ;;  %v2490_v61 = vld [vmem:[#allocation5 + $0x30] sm:$0xff] }
  0x22   :  { %3701 = vst [vmem:[#allocation12_spill] sm:$0xff] %v2426_v32  ;;  %3702 = vst [vmem:[#allocation13_spill] sm:$0xff] %v2435_v36  ;;  %v2448_v41 = vand.u32 4294901760, %v2415_v28  ;;  %1856 = vmatpush3.msra.mxu0 %v2380_v11  ;;  %v226_v42 = vsub.f32 %v2403_v23, %v3574_v33  ;;  %v3569_v44 = vand.u32 4294901760, %v2432_v35  ;;  %v2459_v45 = vsub.f32 %v68_v12, %v2383_v15  ;;  %p2325_p13 = por %p2324_p12, %p2323_p11 }
  0x23   :  { %v345_v43 = vsub.f32 %v2409_v25, %v3573_v34  ;;  %1857 = vmatprep.subr.mxu0 %v2383_v15  ;;  %v339_v47 = vand.u32 4294901760, %v338_v38  ;;  %v233_v48 = vsub.f32 %v2423_v31, %v3571_v39  ;;  %v3568_v49 = vand.u32 4294901760, %v2445_v40  ;;  %v2593_v39 = vld [vmem:[#allocation5 + $0x90] sm:$0xff] }
  0x24   :  { %3703 = vst [vmem:[#allocation14_spill] sm:$0xff] %v2448_v41  ;;  %v2469_v50 = vand.u32 4294901760, %v2437_v37  ;;  %1858 = vmatpush3.msra.mxu0 %v2385_v16  ;;  %v227_v52 = vand.u32 4294901760, %v226_v42  ;;  %v352_v54 = vsub.f32 %v2432_v35, %v3569_v44  ;;  %v3566_v55 = vand.u32 4294901760, %v2459_v45  ;;  %v2603_v34 = vld [vmem:[#allocation5 + $0x10] sm:$0xff]  ;;  %p2326_p0 = pnand %p2325_p13, %p2319_p10 }
  0x25   :  { %v346_v53 = vand.u32 4294901760, %v345_v43  ;;  %1859 = vmatprep.subr.mxu0 %v2387_v17  ;;  %1886 = vmatprep.subr.mxu1 %v339_v47  ;;  %v234_v57 = vand.u32 4294901760, %v233_v48  ;;  %v240_v58 = vsub.f32 %v2445_v40, %v3568_v49  ;;  %v2485_v59 = vsub.f32 %v52_v13, %v2385_v16  ;;  %v2513_v13 = vld [vmem:[#allocation5 + $0x28] sm:$0xff]  ;;  %v2580_v49 = vld [vmem:[#allocation5 + $0x18] sm:$0xff] }
  0x26   :  { %3704 = vst [vmem:[#allocation15_spill] sm:$0xff] %v2469_v50  ;;  %v2488_v60 = vand.u32 4294901760, %v2461_v46  ;;  %1860 = vmatpush3.msra.mxu0 %v2400_v22  ;;  %1887 = vmatpush3.msra.mxu1 %v227_v52  ;;  %v353_v62 = vand.u32 4294901760, %v352_v54  ;;  %v359_v63 = vsub.f32 %v2459_v45, %v3566_v55  ;;  %v2497_v0 = vsub.f32 %v67_v14, %v2387_v17 }
  0x27   :  { %v2500_v1 = vand.u32 4294901760, %v2471_v51  ;;  %1861 = vmatprep.subr.mxu0 %v2406_v24  ;;  %1888 = vmatprep.subr.mxu1 %v346_v53  ;;  %v241_v6 = vand.u32 4294901760, %v240_v58  ;;  %v3564_v7 = vand.u32 4294901760, %v2485_v59  ;;  %v2508_v8 = vsub.f32 %v2392_v19, %v2400_v22 }
  0x28   :  { %3705 = vst [vmem:[#allocation16_spill] sm:$0xff] %v2488_v60  ;;  %v2511_v12 = vand.u32 4294901760, %v2478_v56  ;;  %1862 = vmatpush3.msra.mxu0 %v2420_v30  ;;  %1889 = vmatpush3.msra.mxu1 %v234_v57  ;;  %v360_v14 = vand.u32 4294901760, %v359_v63  ;;  %v3563_v38 = vand.u32 4294901760, %v2497_v0  ;;  %v2519_v42 = vsub.f32 %v2394_v20, %v2406_v24  ;;  %v2536_v20 = vld [vmem:[#allocation5 + $0xa0] sm:$0xff] }
  0x29   :  { %3706 = vst [vmem:[#allocation17_spill] sm:$0xff] %v2500_v1  ;;  %v2522_v43 = vand.u32 4294901760, %v2490_v61  ;;  %1863 = vmatprep.subr.mxu0 %v2426_v32  ;;  %1890 = vmatprep.subr.mxu1 %v353_v62  ;;  %v247_v19 = vsub.f32 %v2485_v59, %v3564_v7  ;;  %v3565_v47 = vand.u32 4294901760, %v2508_v8  ;;  %v2531_v48 = vsub.f32 %v2396_v21, %v2420_v30 }
  0x2a   :  { %3707 = vst [vmem:[#allocation18_spill] sm:$0xff] %v2511_v12  ;;  %v2534_v52 = vand.u32 4294901760, %v2502_v2  ;;  %1864 = vmatpush3.msra.mxu0 %v2435_v36  ;;  %1891 = vmatpush3.msra.mxu1 %v241_v6  ;;  %v366_v53 = vsub.f32 %v2497_v0, %v3563_v38  ;;  %v3567_v54 = vand.u32 4294901760, %v2519_v42  ;;  %v2545_v57 = vsub.f32 %v2411_v26, %v2426_v32  ;;  %v2559_v38 = vld [vmem:[#allocation5 + $0x20] sm:$0xff] }
  0x2b   :  { %3708 = vst [vmem:[#allocation19_spill] sm:$0xff] %v2522_v43  ;;  %v2548_v21 = vand.u32 4294901760, %v2513_v13  ;;  %1865 = vmatprep.subr.mxu0 %v2448_v41  ;;  %1892 = vmatprep.subr.mxu1 %v360_v14  ;;  %v248_v58 = vand.u32 4294901760, %v247_v19  ;;  %v254_v62 = vsub.f32 %v2508_v8, %v3565_v47  ;;  %v3570_v63 = vand.u32 4294901760, %v2531_v48  ;;  %v2569_v47 = vld [vmem:[#allocation5 + $0x98] sm:$0xff] }
  0x2c   :  { %3709 = vst [vmem:[#allocation20_spill] sm:$0xff] %v2534_v52  ;;  %v2557_v6 = vsub.f32 %v2413_v27, %v2435_v36  ;;  %1866 = vmatpush3.msra.mxu0 %v2469_v50  ;;  %v367_v26 = vand.u32 4294901760, %v366_v53  ;;  %v373_v14 = vsub.f32 %v2519_v42, %v3567_v54  ;;  %v3572_v19 = vand.u32 4294901760, %v2545_v57  ;;  %v38_v36 = vld [vmem:[#allocation2] sm:$0xff] }
  0x2d   :  { %3710 = vst [vmem:[#allocation21_spill] sm:$0xff] %v2548_v21  ;;  %v2567_v7 = vand.u32 4294901760, %v2536_v20  ;;  %1893 = vmatpush3.msra.mxu1 %v248_v58  ;;  %1867 = vmatprep.subr.mxu0 %v2488_v60  ;;  %v255_v27 = vand.u32 4294901760, %v254_v62  ;;  %v261_v55 = vsub.f32 %v2531_v48, %v3570_v63  ;;  %v2578_v54 = vsub.f32 %v2415_v28, %v2448_v41 }
  0x2e   :  { %v3575_v53 = vand.u32 4294901760, %v2557_v6  ;;  %1894 = vmatprep.subr.mxu1 %v367_v26  ;;  %1868 = vmatpush3.msra.mxu0 %v2500_v1  ;;  %v374_v44 = vand.u32 4294901760, %v373_v14  ;;  %v380_v58 = vsub.f32 %v2545_v57, %v3572_v19  ;;  %v2587_v62 = vand.u32 4294901760, %v2559_v38 }
  0x2f   :  { %3711 = vst [vmem:[#allocation22_spill] sm:$0xff] %v2567_v7  ;;  %v2591_v63 = vsub.f32 %v2437_v37, %v2469_v50  ;;  %1895 = vmatpush3.msra.mxu1 %v255_v27  ;;  %1869 = vmatprep.subr.mxu0 %v2511_v12  ;;  %v262_v28 = vand.u32 4294901760, %v261_v55  ;;  %v3579_v14 = vand.u32 4294901760, %v2578_v54  ;;  %v2601_v19 = vand.u32 4294901760, %v2569_v47 }
  0x30   :  { %3712 = vst [vmem:[#allocation23_spill] sm:$0xff] %v2587_v62  ;;  %v268_v26 = vsub.f32 %v2557_v6, %v3575_v53  ;;  %1896 = vmatprep.subr.mxu1 %v374_v44  ;;  %1870 = vmatpush3.msra.mxu0 %v2522_v43  ;;  %v381_v37 = vand.u32 4294901760, %v380_v58  ;;  %v2609_v55 = vsub.f32 %v2461_v46, %v2488_v60  ;;  %v2612_v33 = vand.u32 4294901760, %v2580_v49  ;;  %v2614_v53 = vld [vmem:[#allocation5 + $0x88] sm:$0xff] }
  0x31   :  { %3713 = vst [vmem:[#allocation24_spill] sm:$0xff] %v2601_v19  ;;  %v3582_v27 = vand.u32 4294901760, %v2591_v63  ;;  %1897 = vmatpush3.msra.mxu1 %v262_v28  ;;  %1871 = vmatprep.subr.mxu0 %v2534_v52  ;;  %v387_v44 = vsub.f32 %v2578_v54, %v3579_v14  ;;  %v2622_v58 = vsub.f32 %v2471_v51, %v2500_v1  ;;  %v2625_v46 = vand.u32 4294901760, %v2593_v39  ;;  %v2639_v51 = vld [vmem:[#allocation5 + $0x8] sm:$0xff] }
  0x32   :  { %3714 = vst [vmem:[#allocation25_spill] sm:$0xff] %v2612_v33  ;;  %v269_v29 = vand.u32 4294901760, %v268_v26  ;;  %1898 = vmatprep.subr.mxu1 %v381_v37  ;;  %1872 = vmatpush3.msra.mxu0 %v2548_v21  ;;  %v2634_v60 = vsub.f32 %v2478_v56, %v2511_v12  ;;  %v2637_v14 = vand.u32 4294901760, %v2603_v34  ;;  %v2648_v26 = vand.u32 4294901760, %v2614_v53  ;;  %v2650_v56 = vld [vmem:[#allocation5 + $0x80] sm:$0xff] }
  0x33   :  { %3715 = vst [vmem:[#allocation26_spill] sm:$0xff] %v2625_v46  ;;  %v275_v28 = vsub.f32 %v2591_v63, %v3582_v27  ;;  %1873 = vmatprep.subr.mxu0 %v2567_v7  ;;  %v388_v37 = vand.u32 4294901760, %v387_v44  ;;  %v2645_v27 = vsub.f32 %v2490_v61, %v2522_v43  ;;  %v3719_v50 = vand.u32 4294901760, %v2609_v55  ;;  %v2673_v44 = vld [vmem:[#allocation5] sm:$0xff] }
  0x34   :  { %3716 = vst [vmem:[#allocation27_spill] sm:$0xff] %v2637_v14  ;;  %1899 = vmatpush3.msra.mxu1 %v269_v29  ;;  %3718 = vst [vmem:[#allocation29_spill] sm:$0xff] %v2648_v26  ;;  %1874 = vmatpush3.msra.mxu0 %v2587_v62  ;;  %v2659_v1 = vsub.f32 %v2502_v2, %v2534_v52  ;;  %v3721_v61 = vand.u32 4294901760, %v2622_v58  ;;  %v2681_v41 = vand.u32 4294901760, %v2650_v56  ;;  %v2697_v30 = vand.u32 4294901760, %v2673_v44 }
  0x35   :  { %3717 = vst [vmem:[#allocation28_spill] sm:$0xff] %v2645_v27  ;;  %v276_v12 = vand.u32 4294901760, %v275_v28  ;;  %v394_v29 = vsub.f32 %v2609_v55, %v3719_v50  ;;  %1900 = vmatprep.subr.mxu1 %v388_v37  ;;  %1875 = vmatprep.subr.mxu0 %v2601_v19  ;;  %v2667_v28 = vand.u32 4294901760, %v2639_v51  ;;  %v2671_v50 = vsub.f32 %v2513_v13, %v2548_v21 }
  0x36   :  { %3720 = vst [vmem:[#allocation30_spill] sm:$0xff] %v2659_v1  ;;  %v282_v43 = vsub.f32 %v2622_v58, %v3721_v61  ;;  %1876 = vmatpush3.msra.mxu0 %v2612_v33  ;;  %v3723_v37 = vand.u32 4294901760, %v2634_v60  ;;  %v3603_v61 = vand.u32 4294901760, %v2659_v1  ;;  %v3724_v13 = vand.u32 4294901760, %v2645_v27 }
  0x37   :  { %3722 = vst [vmem:[#allocation31_spill] sm:$0xff] %v2667_v28  ;;  %1901 = vmatpush3.msra.mxu1 %v276_v12  ;;  %v395_v2 = vand.u32 4294901760, %v394_v29  ;;  %1877 = vmatprep.subr.mxu0 %v2625_v46  ;;  %v2690_v21 = vsub.f32 %v2536_v20, %v2567_v7  ;;  %v3725_v20 = vand.u32 4294901760, %v2671_v50  ;;  %v106_v7 = vcombine.high %v38_v36, %v38_v36 }
  0x38   :  { %v401_v52 = vsub.f32 %v2634_v60, %v3723_v37  ;;  %v283_v32 = vand.u32 4294901760, %v282_v43  ;;  %v289_v12 = vsub.f32 %v2645_v27, %v3724_v13  ;;  %1878 = vmatpush3.msra.mxu0 %v2637_v14  ;;  %v408_v43 = vsub.f32 %v2659_v1, %v3603_v61 }
  0x39   :  { %1902 = vmatprep.subr.mxu1 %v395_v2  ;;  %v2701_v13 = vsub.f32 %v2559_v38, %v2587_v62  ;;  %1879 = vmatprep.subr.mxu0 %v2648_v26  ;;  %v3608_v2 = vand.u32 4294901760, %v2690_v21  ;;  %v2710_v27 = vand.u32 4294901760, %v38_v36 }
  0x3a   :  { %v402_v37 = vand.u32 4294901760, %v401_v52  ;;  %1903 = vmatpush3.msra.mxu1 %v283_v32  ;;  %v290_v29 = vand.u32 4294901760, %v289_v12  ;;  %v296_v52 = vsub.f32 %v2671_v50, %v3725_v20  ;;  %v409_v61 = vand.u32 4294901760, %v408_v43  ;;  %1880 = vmatpush3.msra.mxu0 %v2667_v28 }
  0x3b   :  { %v3609_v1 = vand.u32 4294901760, %v2701_v13  ;;  %3726 = vst [vmem:[#allocation32_spill] sm:$0xff] %v2710_v27  ;;  %v2714_v32 = vsub.f32 %v2569_v47, %v2601_v19  ;;  %1881 = vmatprep.subr.mxu0 %v2681_v41  ;;  %v415_v12 = vsub.f32 %v2690_v21, %v3608_v2  ;;  %v2724_v43 = vsub.f32 %v2580_v49, %v2612_v33 }
  0x3c   :  { %1904 = vmatprep.subr.mxu1 %v402_v37  ;;  %v297_v38 = vand.u32 4294901760, %v296_v52  ;;  %v2720_v37 = vand.u32 4294901760, %v106_v7  ;;  %1882 = vmatpush3.msra.mxu0 %v2697_v30  ;;  %v2732_v20 = vsub.f32 %v38_v36, %v2710_v27  ;;  %v2736_v52 = vsub.f32 %v2593_v39, %v2625_v46 }
  0x3d   :  { %1905 = vmatpush3.msra.mxu1 %v290_v29  ;;  %v303_v47 = vsub.f32 %v2701_v13, %v3609_v1  ;;  %v416_v2 = vand.u32 4294901760, %v415_v12  ;;  %1921 = vmatprep.subr.mxu0 %v2390_v18  ;;  %v2745_v1 = vsub.f32 %v2603_v34, %v2637_v14  ;;  %v3728_v36 = vand.u32 4294901760, %v2714_v32 }
  0x3e   :  { %3727 = vst [vmem:[#allocation33_spill] sm:$0xff] %v2720_v37  ;;  %1906 = vmatprep.subr.mxu1 %v409_v61  ;;  %v2739_v49 = vsub.f32 %v106_v7, %v2720_v37  ;;  %v3614_v61 = vand.u32 4294901760, %v2724_v43  ;;  %v3617_v39 = vand.u32 4294901760, %v2732_v20  ;;  %447 = vmatprep.mubr.f32.mxu1 %v2720_v37  ;;  %v2770_v37 = vsub.f32 %v2639_v51, %v2667_v28 }
  0x3f   :  { %1907 = vmatpush3.msra.mxu1 %v297_v38  ;;  %v304_v29 = vand.u32 4294901760, %v303_v47  ;;  %v422_v33 = vsub.f32 %v2714_v32, %v3728_v36  ;;  %v2760_v47 = vsub.f32 %v2614_v53, %v2648_v26  ;;  %v2782_v51 = vsub.f32 %v2650_v56, %v2681_v41 }
  0x40   :  { %1908 = vmatprep.subr.mxu1 %v416_v2  ;;  %v310_v12 = vsub.f32 %v2724_v43, %v3614_v61  ;;  %v215_v38 = vsub.f32 %v2732_v20, %v3617_v39  ;;  %v3729_v2 = vand.u32 4294901760, %v2736_v52  ;;  %v3730_v61 = vand.u32 4294901760, %v2739_v49 }
  0x41   :  { %1909 = vmatpush3.msra.mxu1 %v304_v29  ;;  %v423_v36 = vand.u32 4294901760, %v422_v33  ;;  %v3731_v29 = vand.u32 4294901760, %v2745_v1  ;;  %v3627_v26 = vand.u32 4294901760, %v2760_v47 }
  0x42   :  { %v429_v7 = vsub.f32 %v2736_v52, %v3729_v2  ;;  %v209_v34 = vsub.f32 %v2739_v49, %v3730_v61  ;;  %v311_v53 = vand.u32 4294901760, %v310_v12  ;;  %v216_v39 = vand.u32 4294901760, %v215_v38 }
  0x43   :  { %v317_v33 = vsub.f32 %v2745_v1, %v3731_v29  ;;  %1910 = vmatprep.subr.mxu1 %v423_v36  ;;  %v3626_v2 = vand.u32 4294901760, %v2770_v37  ;;  %v436_v61 = vsub.f32 %v2760_v47, %v3627_v26  ;;  %v2789_v12 = vsub.f32 %v2673_v44, %v2697_v30  ;;  %v3735_v29 = vld [vmem:[#allocation12_spill] sm:$0xff]  ;;  %v3748_v26 = vld [vmem:[#allocation25_spill] sm:$0xff] }
  0x44   :  { %v430_v14 = vand.u32 4294901760, %v429_v7  ;;  %v210_v28 = vand.u32 4294901760, %v209_v34  ;;  %1911 = vmatpush3.msra.mxu1 %v311_v53  ;;  %v3625_v7 = vand.u32 4294901760, %v2782_v51 }
  0x45   :  { %v318_v46 = vand.u32 4294901760, %v317_v33  ;;  %3732 = vst [vmem:[#allocation34_spill] sm:$0xff] %v2789_v12  ;;  %v324_v38 = vsub.f32 %v2770_v37, %v3626_v2  ;;  %v437_v56 = vand.u32 4294901760, %v436_v61  ;;  %v3624_v34 = vand.u32 4294901760, %v2789_v12  ;;  %v3736_v33 = vld [vmem:[#allocation30_spill] sm:$0xff]  ;;  %v3737_v61 = vld [vmem:[#allocation13_spill] sm:$0xff] }
  0x46   :  { %1912 = vmatprep.subr.mxu1 %v430_v14  ;;  %211 = vmatprep.mubr.f32.mxu0 %v210_v28  ;;  %v443_v53 = vsub.f32 %v2782_v51, %v3625_v7  ;;  %v3733_v28 = vld [vmem:[#allocation11_spill] sm:$0xff]  ;;  %v3746_v7 = vld [vmem:[#allocation22_spill] sm:$0xff]  ;;  %v3747_v2 = vand.u32 4294901760, %v2390_v18  ;;  %v3755_v18 = vand.u32 4294901760, %v2432_v35 }
  0x47   :  { %1913 = vmatpush3.msra.mxu1 %v318_v46  ;;  %217 = vmatmul.mubr.f32.vlgmr.msra.gmra.mxu0 %v216_v39  ;;  %v325_v36 = vand.u32 4294901760, %v324_v38  ;;  %v331_v14 = vsub.f32 %v2789_v12, %v3624_v34  ;;  %v3734_v39 = vld [vmem:[#allocation28_spill] sm:$0xff]  ;;  %v3738_v38 = vld [vmem:[#allocation14_spill] sm:$0xff]  ;;  %v3745_v34 = vld [vmem:[#allocation21_spill] sm:$0xff] }
  0x48   :  { %1922 = vmatpush3.msra.mxu0 %v2403_v23  ;;  %1914 = vmatprep.subr.mxu1 %v437_v56  ;;  %v444_v46 = vand.u32 4294901760, %v443_v53  ;;  %v3739_v56 = vld [vmem:[#allocation15_spill] sm:$0xff]  ;;  %v3741_v53 = vld [vmem:[#allocation17_spill] sm:$0xff] }
  0x49   :  { %1923 = vmatprep.subr.mxu0 %v2409_v25  ;;  %1915 = vmatpush3.msra.mxu1 %v325_v36  ;;  %v332_v44 = vand.u32 4294901760, %v331_v14  ;;  %v3740_v36 = vld [vmem:[#allocation16_spill] sm:$0xff]  ;;  %v3742_v14 = vld [vmem:[#allocation18_spill] sm:$0xff] }
  0x4a   :  { %1924 = vmatpush3.msra.mxu0 %v2423_v31  ;;  %584 = vmatprep.mubr.f32.mxu0 %v2739_v49 }
  0x4b   :  { %1925 = vmatprep.subr.mxu0 %v2432_v35  ;;  %1916 = vmatprep.subr.mxu1 %v444_v46  ;;  %v3743_v46 = vld [vmem:[#allocation19_spill] sm:$0xff]  ;;  %v3761_v35 = vand.u32 4294901760, %v2732_v20 }
  0x4c   :  { %1926 = vmatpush3.msra.mxu0 %v2445_v40  ;;  %1917 = vmatpush3.msra.mxu1 %v332_v44  ;;  %v3744_v44 = vld [vmem:[#allocation20_spill] sm:$0xff] }
  0x4d   :  { %1927 = vmatprep.subr.mxu0 %v2459_v45  ;;  %449 = vmatmul.mubr.f32.vlgmr.msra.gmra.mxu1 %v2710_v27  ;;  %v3749_v27 = vand.u32 4294901760, %v2403_v23  ;;  %v3757_v23 = vand.u32 4294901760, %v2445_v40  ;;  %v3763_v40 = vand.u32 4294901760, %v2508_v8 }
  0x4e   :  { %1928 = vmatpush3.msra.mxu0 %v2485_v59  ;;  %1956 = vmatprep.subr.mxu1 %v2370_v3 }
  0x4f   :  { %1929 = vmatprep.subr.mxu0 %v2497_v0  ;;  %1957 = vmatpush3.msra.mxu1 %v2372_v4 }
  0x50   :  { %1930 = vmatpush3.msra.mxu0 %v2508_v8  ;;  %1958 = vmatprep.subr.mxu1 %v2374_v5  ;;  %v3767_v8 = vand.u32 4294901760, %v2557_v6 }
  0x51   :  { %1931 = vmatprep.subr.mxu0 %v2519_v42  ;;  %1959 = vmatpush3.msra.mxu1 %v2376_v9 }
  0x52   :  { %1932 = vmatpush3.msra.mxu0 %v2531_v48  ;;  %1960 = vmatprep.subr.mxu1 %v2378_v10 }
  0x53   :  { %1933 = vmatprep.subr.mxu0 %v2545_v57  ;;  %1961 = vmatpush3.msra.mxu1 %v2380_v11 }
  0x54   :  { %1934 = vmatpush3.msra.mxu0 %v2557_v6  ;;  %1962 = vmatprep.subr.mxu1 %v2383_v15 }
  0x55   :  { %1935 = vmatprep.subr.mxu0 %v2578_v54  ;;  %1963 = vmatpush3.msra.mxu1 %v2385_v16 }
  0x56   :  { %1936 = vmatpush3.msra.mxu0 %v2591_v63  ;;  %1964 = vmatprep.subr.mxu1 %v2387_v17 }
  0x57   :  { %1937 = vmatprep.subr.mxu0 %v2609_v55  ;;  %1965 = vmatpush3.msra.mxu1 %v2400_v22 }
  0x58   :  { %1938 = vmatpush3.msra.mxu0 %v2622_v58  ;;  %1966 = vmatprep.subr.mxu1 %v2406_v24 }
  0x59   :  { %1939 = vmatprep.subr.mxu0 %v2634_v60  ;;  %1967 = vmatpush3.msra.mxu1 %v3733_v28 }
  0x5a   :  { %1940 = vmatpush3.msra.mxu0 %v3734_v39  ;;  %1968 = vmatprep.subr.mxu1 %v3735_v29 }
  0x5b   :  { %1941 = vmatprep.subr.mxu0 %v3736_v33  ;;  %1969 = vmatpush3.msra.mxu1 %v3737_v61 }
  0x5c   :  { %1942 = vmatpush3.msra.mxu0 %v2671_v50  ;;  %1970 = vmatprep.subr.mxu1 %v3738_v38 }
  0x5d   :  { %1943 = vmatprep.subr.mxu0 %v2690_v21  ;;  %1971 = vmatpush3.msra.mxu1 %v3739_v56 }
  0x5e   :  { %1944 = vmatpush3.msra.mxu0 %v2701_v13  ;;  %1972 = vmatprep.subr.mxu1 %v3740_v36 }
  0x5f   :  { %1945 = vmatprep.subr.mxu0 %v2714_v32  ;;  %1973 = vmatpush3.msra.mxu1 %v3741_v53 }
  0x60   :  { %1946 = vmatpush3.msra.mxu0 %v2724_v43  ;;  %1974 = vmatprep.subr.mxu1 %v3742_v14 }
  0x61   :  { %1947 = vmatprep.subr.mxu0 %v2736_v52  ;;  %1975 = vmatpush3.msra.mxu1 %v3743_v46 }
  0x62   :  { %1948 = vmatpush3.msra.mxu0 %v2745_v1  ;;  %1976 = vmatprep.subr.mxu1 %v3744_v44 }
  0x63   :  { %1949 = vmatprep.subr.mxu0 %v2760_v47  ;;  %1977 = vmatpush3.msra.mxu1 %v3745_v34  ;;  %v3750_v34 = vld [vmem:[#allocation26_spill] sm:$0xff] }
  0x64   :  { %1950 = vmatpush3.msra.mxu0 %v2770_v37  ;;  %1978 = vmatprep.subr.mxu1 %v3746_v7  ;;  %v3751_v7 = vand.u32 4294901760, %v2409_v25  ;;  %v3758_v25 = vand.u32 4294901760, %v2459_v45  ;;  %v3764_v45 = vand.u32 4294901760, %v2519_v42  ;;  %v86_v42 = vld [vmem:[#allocation5 + $0x170] sm:$0xff] }
  0x65   :  { %1951 = vmatprep.subr.mxu0 %v2782_v51  ;;  %1979 = vmatpush3.msra.mxu1 %v2587_v62  ;;  %v3752_v62 = vld [vmem:[#allocation27_spill] sm:$0xff]  ;;  %v2919_v6 = vand.u32 4294901760, %v86_v42 }
  0x66   :  { %1952 = vmatpush3.msra.mxu0 %v2789_v12  ;;  %1980 = vmatprep.subr.mxu1 %v2601_v19  ;;  %v3753_v12 = vand.u32 4294901760, %v2423_v31  ;;  %v3754_v19 = vld [vmem:[#allocation29_spill] sm:$0xff]  ;;  %v3759_v31 = vand.u32 4294901760, %v2739_v49  ;;  %v84_v49 = vld [vmem:[#allocation5 + $0x160] sm:$0xff] }
  0x67   :  { %587 = vmatmul.mubr.f32.vlgmr.msra.gmra.mxu0 %v2732_v20  ;;  %1991 = vmatprep.subr.mxu0 %v3747_v2  ;;  %v3756_v2 = vld [vmem:[#allocation31_spill] sm:$0xff]  ;;  %3771 = vst [vmem:[#allocation11_spill] sm:$0xff] %v2919_v6 }
  0x68   :  { %1981 = vmatpush3.msra.mxu1 %v3748_v26  ;;  %1992 = vmatpush3.msra.mxu0 %v3749_v27  ;;  %v3760_v27 = vand.u32 4294901760, %v2485_v59  ;;  %v3765_v59 = vand.u32 4294901760, %v2531_v48 }
  0x69   :  { %1982 = vmatprep.subr.mxu1 %v3750_v34  ;;  %1993 = vmatprep.subr.mxu0 %v3751_v7 }
  0x6a   :  { %1983 = vmatpush3.msra.mxu1 %v3752_v62  ;;  %1994 = vmatpush3.msra.mxu0 %v3753_v12  ;;  %v3762_v12 = vand.u32 4294901760, %v2497_v0  ;;  %v3766_v0 = vand.u32 4294901760, %v2545_v57  ;;  %v102_v57 = vld [vmem:[#allocation5 + $0x1f0] sm:$0xff] }
  0x6b   :  { %1984 = vmatprep.subr.mxu1 %v3754_v19  ;;  %1995 = vmatprep.subr.mxu0 %v3755_v18  ;;  %v2933_v20 = vand.u32 4294901760, %v102_v57  ;;  %v99_v18 = vld [vmem:[#allocation5 + $0x1d8] sm:$0xff] }
  0x6c   :  { %1985 = vmatpush3.msra.mxu1 %v3756_v2  ;;  %1996 = vmatpush3.msra.mxu0 %v3757_v23  ;;  %v3781_v23 = vand.u32 4294901760, %v2701_v13 }
  0x6d   :  { %1986 = vmatprep.subr.mxu1 %v2681_v41  ;;  %1997 = vmatprep.subr.mxu0 %v3758_v25  ;;  %v2959_v25 = vand.u32 4294901760, %v84_v49 }
  0x6e   :  { %1987 = vmatpush3.msra.mxu1 %v2697_v30  ;;  %691 = vmatprep.mubr.f32.mxu1 %v3759_v31  ;;  %v2963_v31 = vsub.f32 %v102_v57, %v2933_v20  ;;  %v3794_v57 = vand.u32 4294901760, %v2782_v51  ;;  %v76_v51 = vld [vmem:[#allocation5 + $0x120] sm:$0xff] }
  0x6f   :  { %1998 = vmatpush3.msra.mxu0 %v3760_v27  ;;  %695 = vmatmul.mubr.f32.vlgmr.msra.gmra.mxu1 %v3761_v35  ;;  %3782 = vst [vmem:[#allocation13_spill] sm:$0xff] %v2959_v25  ;;  %v82_v27 = vld [vmem:[#allocation5 + $0x150] sm:$0xff]  ;;  %v3784_v35 = vand.u32 4294901760, %v2724_v43  ;;  %v3788_v43 = vand.u32 4294901760, %v2745_v1 }
  0x70   :  { %1999 = vmatprep.subr.mxu0 %v3762_v12  ;;  %2026 = vmatprep.subr.mxu1 %v2370_v3  ;;  %v87_v3 = vld [vmem:[#allocation5 + $0x178] sm:$0xff] }
  0x71   :  { %2000 = vmatpush3.msra.mxu0 %v3763_v40  ;;  %2027 = vmatpush3.msra.mxu1 %v2372_v4  ;;  %v103_v4 = vld [vmem:[#allocation5 + $0x1f8] sm:$0xff]  ;;  %v2912_v48 = vand.u32 4294901760, %v87_v3  ;;  %v98_v40 = vld [vmem:[#allocation5 + $0x1d0] sm:$0xff] }
  0x72   :  { %2001 = vmatprep.subr.mxu0 %v3764_v45  ;;  %2028 = vmatprep.subr.mxu1 %v2374_v5  ;;  %v3768_v5 = vand.u32 4294901760, %v2578_v54  ;;  %v3772_v54 = vand.u32 4294901760, %v2622_v58  ;;  %v100_v58 = vld [vmem:[#allocation5 + $0x1e0] sm:$0xff] }
  0x73   :  { %2002 = vmatpush3.msra.mxu0 %v3765_v59  ;;  %2029 = vmatpush3.msra.mxu1 %v2376_v9  ;;  %v3769_v9 = vand.u32 4294901760, %v2591_v63  ;;  %v85_v63 = vld [vmem:[#allocation5 + $0x168] sm:$0xff] }
  0x74   :  { %2003 = vmatprep.subr.mxu0 %v3766_v0  ;;  %2030 = vmatprep.subr.mxu1 %v2378_v10  ;;  %v3770_v10 = vand.u32 4294901760, %v2609_v55  ;;  %v3774_v55 = vand.u32 4294901760, %v3734_v39  ;;  %v2949_v39 = vand.u32 4294901760, %v85_v63  ;;  %v3001_v0 = vand.u32 4294901760, %v82_v27 }
  0x75   :  { %2004 = vmatpush3.msra.mxu0 %v3767_v8  ;;  %2031 = vmatpush3.msra.mxu1 %v2380_v11  ;;  %v2917_v11 = vand.u32 4294901760, %v103_v4  ;;  %v81_v8 = vld [vmem:[#allocation5 + $0x148] sm:$0xff] }
  0x76   :  { %2005 = vmatprep.subr.mxu0 %v3768_v5  ;;  %2032 = vmatprep.subr.mxu1 %v2383_v15  ;;  %v101_v15 = vld [vmem:[#allocation5 + $0x1e8] sm:$0xff]  ;;  %3778 = vst [vmem:[#allocation12_spill] sm:$0xff] %v2949_v39  ;;  %v2977_v12 = vsub.f32 %v85_v63, %v2949_v39  ;;  %3789 = vst [vmem:[#allocation16_spill] sm:$0xff] %v3001_v0  ;;  %v3034_v63 = vand.u32 4294901760, %v81_v8 }
  0x77   :  { %2006 = vmatpush3.msra.mxu0 %v3769_v9  ;;  %2033 = vmatpush3.msra.mxu1 %v2385_v16  ;;  %v3773_v16 = vand.u32 4294901760, %v2634_v60  ;;  %v2939_v60 = vsub.f32 %v86_v42, %v2919_v6  ;;  %v2944_v7 = vsub.f32 %v103_v4, %v2917_v11  ;;  %v3790_v4 = vand.u32 4294901760, %v2760_v47  ;;  %v3793_v47 = vld [vmem:[#allocation21_spill] sm:$0xff] }
  0x78   :  { %2007 = vmatprep.subr.mxu0 %v3770_v10  ;;  %2034 = vmatprep.subr.mxu1 %v2387_v17  ;;  %v2931_v17 = vsub.f32 %v87_v3, %v2912_v48  ;;  %v97_v3 = vld [vmem:[#allocation5 + $0x1c8] sm:$0xff]  ;;  %v3792_v9 = vand.u32 4294901760, %v2770_v37  ;;  %3797 = vst [vmem:[#allocation19_spill] sm:$0xff] %v3034_v63 }
  0x79   :  { %2008 = vmatpush3.msra.mxu0 %v3772_v54  ;;  %2035 = vmatpush3.msra.mxu1 %v2400_v22  ;;  %v3775_v22 = vand.u32 4294901760, %v3736_v33  ;;  %v3779_v33 = vand.u32 4294901760, %v2690_v21  ;;  %v3783_v21 = vand.u32 4294901760, %v2714_v32  ;;  %v3635_v13 = vand.u32 4294901760, %v2939_v60  ;;  %v3795_v54 = vld [vmem:[#allocation22_spill] sm:$0xff] }
  0x7a   :  { %2009 = vmatprep.subr.mxu0 %v3773_v16  ;;  %2036 = vmatprep.subr.mxu1 %v2406_v24  ;;  %v2941_v24 = vand.u32 4294901760, %v101_v15  ;;  %v2979_v32 = vand.u32 4294901760, %v99_v18  ;;  %v3032_v16 = vand.u32 4294901760, %v97_v3 }
  0x7b   :  { %2010 = vmatpush3.msra.mxu0 %v3774_v55  ;;  %2037 = vmatpush3.msra.mxu1 %v3733_v28  ;;  %v3777_v28 = vand.u32 4294901760, %v2671_v50  ;;  %v83_v50 = vld [vmem:[#allocation5 + $0x158] sm:$0xff]  ;;  %v3016_v42 = vsub.f32 %v2939_v60, %v3635_v13  ;;  %v80_v55 = vld [vmem:[#allocation5 + $0x140] sm:$0xff] }
  0x7c   :  { %2011 = vmatprep.subr.mxu0 %v3775_v22  ;;  %2038 = vmatprep.subr.mxu1 %v3735_v29  ;;  %3776 = vst [vmem:[#allocation28_spill] sm:$0xff] %v2941_v24  ;;  %v2954_v29 = vand.u32 4294901760, %v100_v58  ;;  %3785 = vst [vmem:[#allocation14_spill] sm:$0xff] %v2979_v32  ;;  %v2984_v45 = vand.u32 4294901760, %v83_v50  ;;  %v3024_v10 = vsub.f32 %v99_v18, %v2979_v32  ;;  %v3798_v22 = vld [vmem:[#allocation34_spill] sm:$0xff] }
  0x7d   :  { %2012 = vmatpush3.msra.mxu0 %v3777_v28  ;;  %2039 = vmatpush3.msra.mxu1 %v3737_v61  ;;  %v3638_v61 = vand.u32 4294901760, %v2931_v17  ;;  %3796 = vst [vmem:[#allocation18_spill] sm:$0xff] %v3032_v16  ;;  %v3800_v28 = vld [vmem:[#allocation33_spill] sm:$0xff]  ;;  %v3047_v18 = vsub.f32 %v82_v27, %v3001_v0 }
  0x7e   :  { %2013 = vmatprep.subr.mxu0 %v3779_v33  ;;  %2040 = vmatprep.subr.mxu1 %v3738_v38  ;;  %3780 = vst [vmem:[#allocation30_spill] sm:$0xff] %v2954_v29  ;;  %v3640_v38 = vand.u32 4294901760, %v2944_v7  ;;  %3787 = vst [vmem:[#allocation15_spill] sm:$0xff] %v2984_v45  ;;  %v2987_v59 = vsub.f32 %v100_v58, %v2954_v29  ;;  %v79_v58 = vld [vmem:[#allocation5 + $0x138] sm:$0xff] }
  0x7f   :  { %2014 = vmatpush3.msra.mxu0 %v3781_v23  ;;  %2041 = vmatpush3.msra.mxu1 %v3739_v56  ;;  %v2971_v56 = vsub.f32 %v101_v15, %v2941_v24  ;;  %v3030_v15 = vsub.f32 %v83_v50, %v2984_v45  ;;  %v96_v23 = vld [vmem:[#allocation5 + $0x1c0] sm:$0xff] }
  0x80   :  { %2015 = vmatprep.subr.mxu0 %v3783_v21  ;;  %2042 = vmatprep.subr.mxu1 %v3740_v36  ;;  %v3786_v36 = vand.u32 4294901760, %v2736_v52  ;;  %v2998_v52 = vsub.f32 %v2931_v17, %v3638_v61  ;;  %v3009_v1 = vsub.f32 %v2944_v7, %v3640_v38  ;;  %v3637_v37 = vand.u32 4294901760, %v2987_v59  ;;  %v3801_v21 = vld [vmem:[#allocation23_spill] sm:$0xff] }
  0x81   :  { %2016 = vmatpush3.msra.mxu0 %v3784_v35  ;;  %2043 = vmatpush3.msra.mxu1 %v3741_v53  ;;  %v2993_v53 = vsub.f32 %v84_v49, %v2959_v25  ;;  %v3634_v5 = vand.u32 4294901760, %v2971_v56  ;;  %v3799_v49 = vand.u32 4294901760, %v3798_v22  ;;  %v3802_v35 = vld [vmem:[#allocation32_spill] sm:$0xff]  ;;  %v3641_v22 = vand.u32 4294901760, %v3024_v10 }
  0x82   :  { %2017 = vmatprep.subr.mxu0 %v3786_v36  ;;  %2044 = vmatprep.subr.mxu1 %v3742_v14  ;;  %v3636_v14 = vand.u32 4294901760, %v2963_v31  ;;  %v77_v38 = vld [vmem:[#allocation5 + $0x128] sm:$0xff] }
  0x83   :  { %2018 = vmatpush3.msra.mxu0 %v3788_v43  ;;  %2045 = vmatpush3.msra.mxu1 %v3743_v46  ;;  %v3011_v46 = vand.u32 4294901760, %v98_v40  ;;  %v3639_v50 = vand.u32 4294901760, %v2993_v53  ;;  %v93_v36 = vld [vmem:[#allocation5 + $0x1a8] sm:$0xff] }
  0x84   :  { %2019 = vmatprep.subr.mxu0 %v3790_v4  ;;  %2046 = vmatprep.subr.mxu1 %v3744_v44  ;;  %v3633_v44 = vand.u32 4294901760, %v2977_v12  ;;  %v3044_v33 = vsub.f32 %v2963_v31, %v3636_v14  ;;  %v3057_v4 = vsub.f32 %v2971_v56, %v3634_v5  ;;  %v3642_v5 = vand.u32 4294901760, %v3030_v15  ;;  %v94_v14 = vld [vmem:[#allocation5 + $0x1b0] sm:$0xff] }
  0x85   :  { %3791 = vst [vmem:[#allocation17_spill] sm:$0xff] %v3011_v46  ;;  %2020 = vmatpush3.msra.mxu0 %v3792_v9  ;;  %2047 = vmatpush3.msra.mxu1 %v3793_v47  ;;  %v3059_v9 = vld [vmem:[#allocation5 + $0x1b8] sm:$0xff]  ;;  %v3062_v27 = vsub.f32 %v98_v40, %v3011_v46  ;;  %v3803_v47 = vld [vmem:[#allocation24_spill] sm:$0xff]  ;;  %v3079_v40 = vsub.f32 %v81_v8, %v3034_v63 }
  0x86   :  { %2021 = vmatprep.subr.mxu0 %v3794_v57  ;;  %2048 = vmatprep.subr.mxu1 %v3795_v54  ;;  %v3069_v57 = vsub.f32 %v2977_v12, %v3633_v44  ;;  %v3071_v54 = vand.u32 4294901760, %v80_v55  ;;  %v3086_v44 = vsub.f32 %v2987_v59, %v3637_v37  ;;  %v3095_v8 = vsub.f32 %v2993_v53, %v3639_v50 }
  0x87   :  { %2022 = vmatpush3.msra.mxu0 %v3799_v49  ;;  %861 = vmatprep.mubr.f32.mxu0 %v3800_v28  ;;  %v3074_v49 = vand.u32 4294901760, %v79_v58  ;;  %3806 = vst [vmem:[#allocation26_spill] sm:$0xff] %v3079_v40  ;;  %v3098_v13 = vand.u32 4294901760, %v3059_v9  ;;  %v3101_v37 = vsub.f32 %v97_v3, %v3032_v16  ;;  %v3132_v3 = vand.u32 4294901760, %v94_v14 }
  0x88   :  { %2049 = vmatpush3.msra.mxu1 %v3801_v21  ;;  %863 = vmatmul.mubr.f32.vlgmr.msra.gmra.mxu0 %v3802_v35  ;;  %3804 = vst [vmem:[#allocation20_spill] sm:$0xff] %v3071_v54  ;;  %v78_v21 = vld [vmem:[#allocation5 + $0x130] sm:$0xff]  ;;  %v3114_v43 = vsub.f32 %v80_v55, %v3071_v54  ;;  %v3130_v55 = vsub.f32 %v3030_v15, %v3642_v5  ;;  %v3143_v50 = vand.u32 4294901760, %v77_v38 }
  0x89   :  { %2050 = vmatprep.subr.mxu1 %v3803_v47  ;;  %2061 = vmatprep.subr.mxu0 %v2917_v11  ;;  %3805 = vst [vmem:[#allocation25_spill] sm:$0xff] %v3074_v49  ;;  %v3081_v47 = vand.u32 4294901760, %v96_v23  ;;  %3808 = vst [vmem:[#allocation29_spill] sm:$0xff] %v3098_v13  ;;  %v3107_v61 = vand.u32 4294901760, %v78_v21 }
  0x8a   :  { %2051 = vmatpush3.msra.mxu1 %v3748_v26  ;;  %2062 = vmatpush3.msra.mxu0 %v2912_v48  ;;  %v1208_v26 = vand.u32 4294901760, %v3044_v33  ;;  %3810 = vst [vmem:[#allocation21_spill] sm:$0xff] %v3114_v43  ;;  %3811 = vst [vmem:[#allocation22_spill] sm:$0xff] %v3132_v3  ;;  %v92_v33 = vld [vmem:[#allocation5 + $0x1a0] sm:$0xff]  ;;  %v1117_v5 = vand.u32 4294901760, %v3130_v55  ;;  %v3191_v55 = vsub.f32 %v77_v38, %v3143_v50 }
  0x8b   :  { %3807 = vst [vmem:[#allocation27_spill] sm:$0xff] %v3081_v47  ;;  %2052 = vmatprep.subr.mxu1 %v3750_v34  ;;  %2063 = vmatprep.subr.mxu0 %v2933_v20  ;;  %3809 = vst [vmem:[#allocation31_spill] sm:$0xff] %v3107_v61  ;;  %v3122_v34 = vsub.f32 %v79_v58, %v3074_v49  ;;  %v3137_v58 = vld [vmem:[#allocation2 + $0x8] sm:$0xff]  ;;  %v3206_v38 = vsub.f32 %v94_v14, %v3132_v3  ;;  %v3826_v14 = vand.u32 4294901760, %v3057_v4 }
  0x8c   :  { %2053 = vmatpush3.msra.mxu1 %v3752_v62  ;;  %2064 = vmatpush3.msra.mxu0 %v2919_v6  ;;  %v3119_v62 = vsub.f32 %v3024_v10, %v3641_v22  ;;  %v3135_v22 = vsub.f32 %v96_v23, %v3081_v47  ;;  %3813 = vst [vmem:[#allocation33_spill] sm:$0xff] %v3143_v50  ;;  %v3814_v23 = vand.u32 4294901760, %v3062_v27  ;;  %v3824_v6 = vand.u32 4294901760, %v3114_v43 }
  0x8d   :  { %2054 = vmatprep.subr.mxu1 %v3754_v19  ;;  %2065 = vmatprep.subr.mxu0 %v2941_v24  ;;  %v3175_v24 = vand.u32 4294901760, %v92_v33 }
  0x8e   :  { %2055 = vmatpush3.msra.mxu1 %v3756_v2  ;;  %2066 = vmatpush3.msra.mxu0 %v2949_v39  ;;  %3812 = vst [vmem:[#allocation34_spill] sm:$0xff] %v3135_v22  ;;  %v3151_v39 = vsub.f32 %v3062_v27, %v3814_v23  ;;  %v3815_v2 = vand.u32 4294901760, %v3047_v18  ;;  %v3819_v23 = vand.u32 4294901760, %v2998_v52 }
  0x8f   :  { %2056 = vmatprep.subr.mxu1 %v2681_v41  ;;  %2067 = vmatprep.subr.mxu0 %v2954_v29  ;;  %v3154_v41 = vsub.f32 %v78_v21, %v3107_v61  ;;  %v3161_v29 = vand.u32 4294901760, %v76_v51  ;;  %v107_v21 = vcombine.high %v3137_v58, %v3137_v58 }
  0x90   :  { %2057 = vmatpush3.msra.mxu1 %v2697_v30  ;;  %965 = vmatprep.mubr.f32.mxu1 %v3800_v28  ;;  %v3159_v19 = vsub.f32 %v3047_v18, %v3815_v2  ;;  %v1229_v30 = vand.u32 4294901760, %v3119_v62  ;;  %v3166_v28 = vand.u32 4294901760, %v93_v36  ;;  %v3818_v2 = vand.u32 4294901760, %v3009_v1 }
  0x91   :  { %3816 = vst [vmem:[#allocation23_spill] sm:$0xff] %v3161_v29  ;;  %2068 = vmatpush3.msra.mxu0 %v2959_v25  ;;  %967 = vmatmul.mubr.f32.vlgmr.msra.gmra.mxu1 %v3802_v35  ;;  %v3180_v62 = vsub.f32 %v3059_v9, %v3098_v13  ;;  %v75_v25 = vld [vmem:[#allocation5 + $0x118] sm:$0xff]  ;;  %v1236_v52 = vand.u32 4294901760, %v3151_v39  ;;  %v90_v39 = vld [vmem:[#allocation5 + $0x190] sm:$0xff] }
  0x92   :  { %3817 = vst [vmem:[#allocation32_spill] sm:$0xff] %v3166_v28  ;;  %2069 = vmatprep.subr.mxu0 %v2979_v32  ;;  %2096 = vmatprep.subr.mxu1 %v3818_v2  ;;  %v3820_v32 = vand.u32 4294901760, %v3101_v37  ;;  %v3821_v2 = vand.u32 4294901760, %v3079_v40  ;;  %v91_v9 = vld [vmem:[#allocation5 + $0x198] sm:$0xff] }
  0x93   :  { %2070 = vmatpush3.msra.mxu0 %v2984_v45  ;;  %2097 = vmatpush3.msra.mxu1 %v3819_v23  ;;  %v1124_v23 = vand.u32 4294901760, %v3159_v19  ;;  %v74_v19 = vld [vmem:[#allocation5 + $0x110] sm:$0xff]  ;;  %v3221_v45 = vand.u32 4294901760, %v107_v21 }
  0x94   :  { %v3188_v1 = vsub.f32 %v3101_v37, %v3820_v32  ;;  %v3196_v35 = vsub.f32 %v3079_v40, %v3821_v2  ;;  %2071 = vmatprep.subr.mxu0 %v3011_v46  ;;  %2098 = vmatprep.subr.mxu1 %v1208_v26  ;;  %v3203_v32 = vsub.f32 %v76_v51, %v3161_v29  ;;  %v3823_v2 = vand.u32 4294901760, %v3016_v42 }
  0x95   :  { %2072 = vmatpush3.msra.mxu0 %v3001_v0  ;;  %v3214_v46 = vsub.f32 %v3114_v43, %v3824_v6  ;;  %v3216_v26 = vand.u32 4294901760, %v75_v25  ;;  %v3219_v51 = vsub.f32 %v93_v36, %v3166_v28  ;;  %3825 = vst [vmem:[#allocation35_spill] sm:$0xff] %v3221_v45  ;;  %v3827_v42 = vand.u32 4294901760, %v3135_v22  ;;  %v89_v0 = vld [vmem:[#allocation5 + $0x188] sm:$0xff]  ;;  %1309 = vmatprep.mubr.f32.mxu1 %v3221_v45 }
  0x96   :  { %3822 = vst [vmem:[#allocation24_spill] sm:$0xff] %v3203_v32  ;;  %2099 = vmatpush3.msra.mxu1 %v3823_v2  ;;  %2073 = vmatprep.subr.mxu0 %v3032_v16  ;;  %v3231_v6 = vand.u32 4294901760, %v91_v9  ;;  %v3235_v43 = vand.u32 4294901760, %v3137_v58  ;;  %v3829_v36 = vand.u32 4294901760, %v3069_v57  ;;  %v1243_v4 = vand.u32 4294901760, %v3188_v1 }
  0x97   :  { %2100 = vmatprep.subr.mxu1 %v3826_v14  ;;  %v3229_v2 = vsub.f32 %v3135_v22, %v3827_v42  ;;  %2074 = vmatpush3.msra.mxu0 %v3034_v63  ;;  %v1131_v14 = vand.u32 4294901760, %v3196_v35  ;;  %v3830_v16 = vand.u32 4294901760, %v3122_v34  ;;  %v3831_v40 = vand.u32 4294901760, %v3086_v44 }
  0x98   :  { %3828 = vst [vmem:[#allocation36_spill] sm:$0xff] %v3235_v43  ;;  %2101 = vmatpush3.msra.mxu1 %v3829_v36  ;;  %2075 = vmatprep.subr.mxu0 %v3081_v47  ;;  %v3251_v63 = vand.u32 4294901760, %v90_v39  ;;  %v3254_v1 = vand.u32 4294901760, %v74_v19  ;;  %v3257_v35 = vsub.f32 %v92_v33, %v3175_v24  ;;  %v1138_v36 = vand.u32 4294901760, %v3214_v46  ;;  %v88_v46 = vld [vmem:[#allocation5 + $0x180] sm:$0xff] }
  0x99   :  { %v3245_v42 = vsub.f32 %v3122_v34, %v3830_v16  ;;  %2102 = vmatprep.subr.mxu1 %v3831_v40  ;;  %2076 = vmatpush3.msra.mxu0 %v3071_v54  ;;  %v3833_v16 = vand.u32 4294901760, %v3095_v8  ;;  %v3264_v22 = vsub.f32 %v75_v25, %v3216_v26  ;;  %v73_v40 = vld [vmem:[#allocation5 + $0x108] sm:$0xff]  ;;  %v3268_v57 = vsub.f32 %v107_v21, %v3221_v45 }
  0x9a   :  { %3832 = vst [vmem:[#allocation37_spill] sm:$0xff] %v3251_v63  ;;  %2077 = vmatprep.subr.mxu0 %v3098_v13  ;;  %v1250_v33 = vand.u32 4294901760, %v3229_v2  ;;  %v3834_v54 = vand.u32 4294901760, %v3180_v62  ;;  %v3279_v25 = vsub.f32 %v3137_v58, %v3235_v43  ;;  %v72_v13 = vld [vmem:[#allocation5 + $0x100] sm:$0xff]  ;;  %v3836_v58 = vand.u32 4294901760, %v3206_v38 }
  0x9b   :  { %2103 = vmatpush3.msra.mxu1 %v3833_v16  ;;  %v3275_v16 = vand.u32 4294901760, %v89_v0  ;;  %2078 = vmatpush3.msra.mxu0 %v3074_v49  ;;  %v1145_v21 = vand.u32 4294901760, %v3245_v42  ;;  %v3297_v42 = vand.u32 4294901760, %v73_v40  ;;  %v3311_v47 = vand.u32 4294901760, %v72_v13  ;;  %v3868_v45 = vld [vmem:[#allocation31_spill] sm:$0xff] }
  0x9c   :  { %2104 = vmatprep.subr.mxu1 %v1229_v30  ;;  %v1256_v8 = vsub.f32 %v3180_v62, %v3834_v54  ;;  %v3835_v30 = vand.u32 4294901760, %v3154_v41  ;;  %v3288_v54 = vsub.f32 %v91_v9, %v3231_v6  ;;  %2079 = vmatprep.subr.mxu0 %v3132_v3  ;;  %v1263_v49 = vsub.f32 %v3206_v38, %v3836_v58 }
  0x9d   :  { %2105 = vmatpush3.msra.mxu1 %v1117_v5  ;;  %v3295_v5 = vsub.f32 %v74_v19, %v3254_v1  ;;  %2080 = vmatpush3.msra.mxu0 %v3107_v61  ;;  %v3837_v9 = vand.u32 4294901760, %v3219_v51  ;;  %v3304_v3 = vand.u32 4294901760, %v88_v46  ;;  %v3308_v58 = vsub.f32 %v90_v39, %v3251_v63 }
  0x9e   :  { %v1151_v2 = vsub.f32 %v3154_v41, %v3835_v30  ;;  %2106 = vmatprep.subr.mxu1 %v1236_v52  ;;  %2081 = vmatprep.subr.mxu0 %v3166_v28  ;;  %v1257_v19 = vand.u32 4294901760, %v1256_v8  ;;  %v3685_v30 = vand.u32 4294901760, %v3203_v32  ;;  %v3838_v61 = vand.u32 4294901760, %v3191_v55 }
  0x9f   :  { %2107 = vmatpush3.msra.mxu1 %v1124_v23  ;;  %v1270_v44 = vsub.f32 %v3219_v51, %v3837_v9  ;;  %2082 = vmatpush3.msra.mxu0 %v3143_v50  ;;  %v3321_v28 = vsub.f32 %v89_v0, %v3275_v16  ;;  %v3325_v8 = vsub.f32 %v73_v40, %v3297_v42  ;;  %v3839_v23 = vand.u32 4294901760, %v3257_v35 }
  0xa0   :  { %2108 = vmatprep.subr.mxu1 %v1243_v4  ;;  %v1152_v9 = vand.u32 4294901760, %v1151_v2  ;;  %v1158_v52 = vsub.f32 %v3191_v55, %v3838_v61  ;;  %2083 = vmatprep.subr.mxu0 %v3175_v24  ;;  %v1264_v4 = vand.u32 4294901760, %v1263_v49  ;;  %v3688_v2 = vand.u32 4294901760, %v3264_v22 }
  0xa1   :  { %2109 = vmatpush3.msra.mxu1 %v1131_v14  ;;  %v1277_v14 = vsub.f32 %v3257_v35, %v3839_v23  ;;  %2084 = vmatpush3.msra.mxu0 %v3161_v29  ;;  %v1271_v61 = vand.u32 4294901760, %v1270_v44  ;;  %v3840_v0 = vand.u32 4294901760, %v3268_v57  ;;  %v3337_v49 = vsub.f32 %v88_v46, %v3304_v3 }
  0xa2   :  { %2110 = vmatprep.subr.mxu1 %v1250_v33  ;;  %2085 = vmatprep.subr.mxu0 %v3231_v6  ;;  %v3341_v40 = vsub.f32 %v72_v13, %v3311_v47  ;;  %v3843_v44 = vand.u32 4294901760, %v3279_v25  ;;  %v1159_v46 = vand.u32 4294901760, %v1158_v52  ;;  %v3844_v33 = vand.u32 4294901760, %v3288_v54 }
  0xa3   :  { %2111 = vmatpush3.msra.mxu1 %v1138_v36  ;;  %v1071_v39 = vsub.f32 %v3268_v57, %v3840_v0  ;;  %3841 = vst [vmem:[#allocation38_spill] sm:$0xff] %v3337_v49  ;;  %v1165_v36 = vsub.f32 %v3203_v32, %v3685_v30  ;;  %2086 = vmatpush3.msra.mxu0 %v3216_v26  ;;  %v1278_v30 = vand.u32 4294901760, %v1277_v14  ;;  %v3845_v52 = vand.u32 4294901760, %v3308_v58 }
  0xa4   :  { %2112 = vmatprep.subr.mxu1 %v1257_v19  ;;  %3842 = vst [vmem:[#allocation39_spill] sm:$0xff] %v3341_v40  ;;  %v1077_v23 = vsub.f32 %v3279_v25, %v3843_v44  ;;  %v1284_v19 = vsub.f32 %v3288_v54, %v3844_v33  ;;  %2087 = vmatprep.subr.mxu0 %v3251_v63  ;;  %v3690_v13 = vand.u32 4294901760, %v3337_v49  ;;  %v3846_v63 = vand.u32 4294901760, %v3295_v5 }
  0xa5   :  { %2113 = vmatpush3.msra.mxu1 %v1145_v21  ;;  %v1172_v44 = vsub.f32 %v3264_v22, %v3688_v2  ;;  %2088 = vmatpush3.msra.mxu0 %v3254_v1  ;;  %v1072_v21 = vand.u32 4294901760, %v1071_v39  ;;  %v1291_v33 = vsub.f32 %v3308_v58, %v3845_v52  ;;  %v3689_v0 = vand.u32 4294901760, %v3341_v40 }
  0xa6   :  { %2114 = vmatprep.subr.mxu1 %v1264_v4  ;;  %2089 = vmatprep.subr.mxu0 %v3275_v16  ;;  %v1166_v4 = vand.u32 4294901760, %v1165_v36  ;;  %v1078_v14 = vand.u32 4294901760, %v1077_v23  ;;  %v1179_v2 = vsub.f32 %v3295_v5, %v3846_v63  ;;  %v3847_v39 = vand.u32 4294901760, %v3321_v28 }
  0xa7   :  { %2115 = vmatpush3.msra.mxu1 %v1152_v9  ;;  %2090 = vmatpush3.msra.mxu0 %v3297_v42  ;;  %v1285_v9 = vand.u32 4294901760, %v1284_v19  ;;  %v3848_v36 = vand.u32 4294901760, %v3325_v8  ;;  %v1292_v63 = vand.u32 4294901760, %v1291_v33 }
  0xa8   :  { %2116 = vmatprep.subr.mxu1 %v1271_v61  ;;  %v1298_v52 = vsub.f32 %v3321_v28, %v3847_v39  ;;  %2091 = vmatprep.subr.mxu0 %v3304_v3  ;;  %v1173_v61 = vand.u32 4294901760, %v1172_v44  ;;  %v1180_v19 = vand.u32 4294901760, %v1179_v2  ;;  %v3852_v39 = vld [vmem:[#allocation12_spill] sm:$0xff] }
  0xa9   :  { %2117 = vmatpush3.msra.mxu1 %v1159_v46  ;;  %v1186_v23 = vsub.f32 %v3325_v8, %v3848_v36  ;;  %2092 = vmatpush3.msra.mxu0 %v3311_v47  ;;  %v1305_v46 = vsub.f32 %v3337_v49, %v3690_v13  ;;  %v3855_v36 = vld [vmem:[#allocation21_spill] sm:$0xff] }
  0xaa   :  { %2118 = vmatprep.subr.mxu1 %v1278_v30  ;;  %1073 = vmatprep.mubr.f32.mxu0 %v1072_v21  ;;  %v1193_v30 = vsub.f32 %v3341_v40, %v3689_v0  ;;  %v1299_v44 = vand.u32 4294901760, %v1298_v52  ;;  %v3853_v52 = vld [vmem:[#allocation34_spill] sm:$0xff]  ;;  %v3865_v0 = vld [vmem:[#allocation29_spill] sm:$0xff] }
  0xab   :  { %2119 = vmatpush3.msra.mxu1 %v1166_v4  ;;  %1079 = vmatmul.mubr.f32.vlgmr.msra.gmra.mxu0 %v1078_v14  ;;  %v1187_v21 = vand.u32 4294901760, %v1186_v23  ;;  %v1306_v33 = vand.u32 4294901760, %v1305_v46  ;;  %v3849_v4 = vld [vmem:[#allocation11_spill] sm:$0xff]  ;;  %v3850_v14 = vld [vmem:[#allocation28_spill] sm:$0xff]  ;;  %v3856_v23 = vld [vmem:[#allocation13_spill] sm:$0xff] }
  0xac   :  { %2120 = vmatprep.subr.mxu1 %v1285_v9  ;;  %2131 = vmatprep.subr.mxu0 %v2944_v7  ;;  %v1194_v2 = vand.u32 4294901760, %v1193_v30  ;;  %v3851_v9 = vld [vmem:[#allocation26_spill] sm:$0xff]  ;;  %v3858_v46 = vld [vmem:[#allocation15_spill] sm:$0xff]  ;;  %v3860_v30 = vld [vmem:[#allocation16_spill] sm:$0xff] }
  0xad   :  { %2121 = vmatpush3.msra.mxu1 %v1173_v61  ;;  %2132 = vmatpush3.msra.mxu0 %v2931_v17  ;;  %v3854_v61 = vld [vmem:[#allocation30_spill] sm:$0xff]  ;;  %v3866_v13 = vld [vmem:[#allocation25_spill] sm:$0xff] }
  0xae   :  { %2122 = vmatprep.subr.mxu1 %v1292_v63  ;;  %2133 = vmatprep.subr.mxu0 %v2963_v31  ;;  %v3857_v63 = vld [vmem:[#allocation14_spill] sm:$0xff] }
  0xaf   :  { %2123 = vmatpush3.msra.mxu1 %v1180_v19  ;;  %2134 = vmatpush3.msra.mxu0 %v2939_v60  ;;  %v3859_v19 = vld [vmem:[#allocation17_spill] sm:$0xff] }
  0xb0   :  { %2124 = vmatprep.subr.mxu1 %v1299_v44  ;;  %2135 = vmatprep.subr.mxu0 %v2971_v56  ;;  %v3861_v44 = vld [vmem:[#allocation18_spill] sm:$0xff] }
  0xb1   :  { %2125 = vmatpush3.msra.mxu1 %v1187_v21  ;;  %2136 = vmatpush3.msra.mxu0 %v2977_v12  ;;  %v3862_v21 = vld [vmem:[#allocation19_spill] sm:$0xff] }
  0xb2   :  { %2126 = vmatprep.subr.mxu1 %v1306_v33  ;;  %2137 = vmatprep.subr.mxu0 %v2987_v59  ;;  %v3863_v33 = vld [vmem:[#allocation27_spill] sm:$0xff] }
  0xb3   :  { %2127 = vmatpush3.msra.mxu1 %v1194_v2  ;;  %2138 = vmatpush3.msra.mxu0 %v2993_v53  ;;  %v3864_v2 = vld [vmem:[#allocation20_spill] sm:$0xff] }
  0xb4   :  { %1311 = vmatmul.mubr.f32.vlgmr.msra.gmra.mxu1 %v3235_v43  ;;  %2139 = vmatprep.subr.mxu0 %v3024_v10  ;;  %v3867_v43 = vld [vmem:[#allocation22_spill] sm:$0xff] }
  0xb5   :  { %2166 = vmatprep.subr.mxu1 %v2917_v11  ;;  %2140 = vmatpush3.msra.mxu0 %v3030_v15 }
  0xb6   :  { %2167 = vmatpush3.msra.mxu1 %v2912_v48  ;;  %2141 = vmatprep.subr.mxu0 %v3062_v27 }
  0xb7   :  { %2168 = vmatprep.subr.mxu1 %v2933_v20  ;;  %2142 = vmatpush3.msra.mxu0 %v3047_v18 }
  0xb8   :  { %2169 = vmatpush3.msra.mxu1 %v3849_v4  ;;  %2143 = vmatprep.subr.mxu0 %v3101_v37 }
  0xb9   :  { %2170 = vmatprep.subr.mxu1 %v3850_v14  ;;  %2144 = vmatpush3.msra.mxu0 %v3851_v9 }
  0xba   :  { %2171 = vmatpush3.msra.mxu1 %v3852_v39  ;;  %2145 = vmatprep.subr.mxu0 %v3853_v52 }
  0xbb   :  { %2172 = vmatprep.subr.mxu1 %v3854_v61  ;;  %2146 = vmatpush3.msra.mxu0 %v3855_v36 }
  0xbc   :  { %2173 = vmatpush3.msra.mxu1 %v3856_v23  ;;  %2147 = vmatprep.subr.mxu0 %v3180_v62 }
  0xbd   :  { %2174 = vmatprep.subr.mxu1 %v3857_v63  ;;  %2148 = vmatpush3.msra.mxu0 %v3122_v34 }
  0xbe   :  { %2175 = vmatpush3.msra.mxu1 %v3858_v46  ;;  %2149 = vmatprep.subr.mxu0 %v3206_v38 }
  0xbf   :  { %2176 = vmatprep.subr.mxu1 %v3859_v19  ;;  %2150 = vmatpush3.msra.mxu0 %v3154_v41 }
  0xc0   :  { %2177 = vmatpush3.msra.mxu1 %v3860_v30  ;;  %2151 = vmatprep.subr.mxu0 %v3219_v51 }
  0xc1   :  { %2178 = vmatprep.subr.mxu1 %v3861_v44  ;;  %2152 = vmatpush3.msra.mxu0 %v3191_v55 }
  0xc2   :  { %2179 = vmatpush3.msra.mxu1 %v3862_v21  ;;  %2153 = vmatprep.subr.mxu0 %v3257_v35 }
  0xc3   :  { %2180 = vmatprep.subr.mxu1 %v3863_v33  ;;  %2154 = vmatpush3.msra.mxu0 %v3203_v32  ;;  %v3869_v32 = vld [vmem:[#allocation32_spill] sm:$0xff] }
  0xc4   :  { %2181 = vmatpush3.msra.mxu1 %v3864_v2  ;;  %2155 = vmatprep.subr.mxu0 %v3288_v54 }
  0xc5   :  { %2182 = vmatprep.subr.mxu1 %v3865_v0  ;;  %2156 = vmatpush3.msra.mxu0 %v3264_v22 }
  0xc6   :  { %2183 = vmatpush3.msra.mxu1 %v3866_v13  ;;  %2157 = vmatprep.subr.mxu0 %v3308_v58 }
  0xc7   :  { %2184 = vmatprep.subr.mxu1 %v3867_v43  ;;  %2158 = vmatpush3.msra.mxu0 %v3295_v5 }
  0xc8   :  { %2185 = vmatpush3.msra.mxu1 %v3868_v45  ;;  %2159 = vmatprep.subr.mxu0 %v3321_v28 }
  0xc9   :  { %2186 = vmatprep.subr.mxu1 %v3869_v32  ;;  %2160 = vmatpush3.msra.mxu0 %v3325_v8  ;;  %v3870_v32 = vand.u32 4294901760, %v2944_v7  ;;  %v3875_v7 = vand.u32 4294901760, %v2971_v56  ;;  %v3880_v56 = vand.u32 4294901760, %v3279_v25 }
  0xca   :  { %2187 = vmatpush3.msra.mxu1 %v3143_v50  ;;  %2161 = vmatprep.subr.mxu0 %v3337_v49  ;;  %v3871_v50 = vand.u32 4294901760, %v2931_v17  ;;  %v3872_v49 = vld [vmem:[#allocation37_spill] sm:$0xff]  ;;  %v3876_v17 = vand.u32 4294901760, %v2977_v12  ;;  %v3882_v12 = vand.u32 4294901760, %v3030_v15  ;;  %v3889_v15 = vand.u32 4294901760, %v3180_v62 }
  0xcb   :  { %2188 = vmatprep.subr.mxu1 %v3175_v24  ;;  %2162 = vmatpush3.msra.mxu0 %v3341_v40  ;;  %v3873_v40 = vand.u32 4294901760, %v2963_v31  ;;  %v3877_v31 = vand.u32 4294901760, %v2987_v59  ;;  %v3883_v59 = vand.u32 4294901760, %v3062_v27  ;;  %v3892_v27 = vand.u32 4294901760, %v3154_v41 }
  0xcc   :  { %1446 = vmatprep.mubr.f32.mxu0 %v3268_v57  ;;  %2189 = vmatpush3.msra.mxu1 %v3161_v29  ;;  %v3874_v29 = vand.u32 4294901760, %v2939_v60  ;;  %v3878_v60 = vand.u32 4294901760, %v3268_v57  ;;  %v3893_v62 = vand.u32 4294901760, %v3219_v51  ;;  %v3898_v51 = vand.u32 4294901760, %v3288_v54  ;;  %v3903_v54 = vld [vmem:[#allocation32_spill] sm:$0xff] }
  0xcd   :  { %1449 = vmatmul.mubr.f32.vlgmr.msra.gmra.mxu0 %v3279_v25  ;;  %2190 = vmatprep.subr.mxu1 %v3231_v6  ;;  %v3900_v57 = vand.u32 4294901760, %v3308_v58  ;;  %v3902_v25 = vand.u32 4294901760, %v3321_v28  ;;  %v3912_v28 = vld [vmem:[#allocation36_spill] sm:$0xff] }
  0xce   :  { %2201 = vmatprep.subr.mxu0 %v3870_v32  ;;  %2191 = vmatpush3.msra.mxu1 %v3216_v26  ;;  %v3895_v32 = vand.u32 4294901760, %v3257_v35  ;;  %v3901_v35 = vand.u32 4294901760, %v3295_v5 }
  0xcf   :  { %2202 = vmatpush3.msra.mxu0 %v3871_v50  ;;  %2192 = vmatprep.subr.mxu1 %v3872_v49  ;;  %v3881_v50 = vand.u32 4294901760, %v3024_v10  ;;  %v3885_v10 = vand.u32 4294901760, %v3101_v37  ;;  %v3890_v37 = vand.u32 4294901760, %v3122_v34  ;;  %v3894_v34 = vand.u32 4294901760, %v3191_v55 }
  0xd0   :  { %2203 = vmatprep.subr.mxu0 %v3873_v40  ;;  %2193 = vmatpush3.msra.mxu1 %v3254_v1  ;;  %v3899_v55 = vand.u32 4294901760, %v3264_v22  ;;  %v3904_v22 = vand.u32 4294901760, %v3325_v8  ;;  %v3905_v40 = vld [vmem:[#allocation33_spill] sm:$0xff] }
  0xd1   :  { %2204 = vmatpush3.msra.mxu0 %v3874_v29  ;;  %2194 = vmatprep.subr.mxu1 %v3275_v16  ;;  %v3879_v29 = vand.u32 4294901760, %v2993_v53  ;;  %v3884_v53 = vand.u32 4294901760, %v3047_v18  ;;  %v3891_v18 = vand.u32 4294901760, %v3206_v38  ;;  %v3896_v38 = vld [vmem:[#allocation24_spill] sm:$0xff] }
  0xd2   :  { %2205 = vmatprep.subr.mxu0 %v3875_v7  ;;  %2195 = vmatpush3.msra.mxu1 %v3297_v42  ;;  %v3897_v41 = vand.u32 4294901760, %v3896_v38 }
  0xd3   :  { %2206 = vmatpush3.msra.mxu0 %v3876_v17  ;;  %2196 = vmatprep.subr.mxu1 %v3304_v3 }
  0xd4   :  { %2207 = vmatprep.subr.mxu0 %v3877_v31  ;;  %2197 = vmatpush3.msra.mxu1 %v3311_v47 }
  0xd5   :  { %1553 = vmatprep.mubr.f32.mxu1 %v3878_v60  ;;  %2208 = vmatpush3.msra.mxu0 %v3879_v29 }
  0xd6   :  { %1557 = vmatmul.mubr.f32.vlgmr.msra.gmra.mxu1 %v3880_v56  ;;  %2209 = vmatprep.subr.mxu0 %v3881_v50 }
  0xd7   :  { %2236 = vmatprep.subr.mxu1 %v2917_v11  ;;  %2210 = vmatpush3.msra.mxu0 %v3882_v12  ;;  %v3886_v11 = vand.u32 4294901760, %v3851_v9 }
  0xd8   :  { %2237 = vmatpush3.msra.mxu1 %v2912_v48  ;;  %2211 = vmatprep.subr.mxu0 %v3883_v59  ;;  %v3887_v48 = vand.u32 4294901760, %v3853_v52 }
  0xd9   :  { %2238 = vmatprep.subr.mxu1 %v2933_v20  ;;  %2212 = vmatpush3.msra.mxu0 %v3884_v53  ;;  %v3888_v20 = vand.u32 4294901760, %v3855_v36 }
  0xda   :  { %2239 = vmatpush3.msra.mxu1 %v3849_v4  ;;  %2213 = vmatprep.subr.mxu0 %v3885_v10 }
  0xdb   :  { %2240 = vmatprep.subr.mxu1 %v3850_v14  ;;  %2214 = vmatpush3.msra.mxu0 %v3886_v11 }
  0xdc   :  { %2241 = vmatpush3.msra.mxu1 %v3852_v39  ;;  %2215 = vmatprep.subr.mxu0 %v3887_v48 }
  0xdd   :  { %2242 = vmatprep.subr.mxu1 %v3854_v61  ;;  %2216 = vmatpush3.msra.mxu0 %v3888_v20 }
  0xde   :  { %2243 = vmatpush3.msra.mxu1 %v3856_v23  ;;  %2217 = vmatprep.subr.mxu0 %v3889_v15 }
  0xdf   :  { %2244 = vmatprep.subr.mxu1 %v3857_v63  ;;  %2218 = vmatpush3.msra.mxu0 %v3890_v37 }
  0xe0   :  { %2245 = vmatpush3.msra.mxu1 %v3858_v46  ;;  %2219 = vmatprep.subr.mxu0 %v3891_v18 }
  0xe1   :  { %2246 = vmatprep.subr.mxu1 %v3859_v19  ;;  %2220 = vmatpush3.msra.mxu0 %v3892_v27 }
  0xe2   :  { %2247 = vmatpush3.msra.mxu1 %v3860_v30  ;;  %2221 = vmatprep.subr.mxu0 %v3893_v62 }
  0xe3   :  { %2248 = vmatprep.subr.mxu1 %v3861_v44  ;;  %2222 = vmatpush3.msra.mxu0 %v3894_v34 }
  0xe4   :  { %2249 = vmatpush3.msra.mxu1 %v3862_v21  ;;  %2223 = vmatprep.subr.mxu0 %v3895_v32 }
  0xe5   :  { %2250 = vmatprep.subr.mxu1 %v3863_v33  ;;  %2224 = vmatpush3.msra.mxu0 %v3897_v41 }
  0xe6   :  { %2251 = vmatpush3.msra.mxu1 %v3864_v2  ;;  %2225 = vmatprep.subr.mxu0 %v3898_v51 }
  0xe7   :  { %2252 = vmatprep.subr.mxu1 %v3865_v0  ;;  %2226 = vmatpush3.msra.mxu0 %v3899_v55  ;;  %v3906_v0 = vld [vmem:[#allocation38_spill] sm:$0xff] }
  0xe8   :  { %2253 = vmatpush3.msra.mxu1 %v3866_v13  ;;  %2227 = vmatprep.subr.mxu0 %v3900_v57  ;;  %v3907_v58 = vand.u32 4294901760, %v3906_v0  ;;  %v3910_v13 = vld [vmem:[#allocation35_spill] sm:$0xff] }
  0xe9   :  { %2254 = vmatprep.subr.mxu1 %v3867_v43  ;;  %2228 = vmatpush3.msra.mxu0 %v3901_v35  ;;  %v3908_v43 = vld [vmem:[#allocation39_spill] sm:$0xff] }
  0xea   :  { %2255 = vmatpush3.msra.mxu1 %v3868_v45  ;;  %2229 = vmatprep.subr.mxu0 %v3902_v25  ;;  %v3909_v5 = vand.u32 4294901760, %v3908_v43  ;;  %v3911_v45 = vld [vmem:[#allocation23_spill] sm:$0xff] }
  0xeb   :  { %2256 = vmatprep.subr.mxu1 %v3903_v54  ;;  %2230 = vmatpush3.msra.mxu0 %v3904_v22 }
  0xec   :  { %2257 = vmatpush3.msra.mxu1 %v3905_v40  ;;  %2231 = vmatprep.subr.mxu0 %v3907_v58 }
  0xed   :  { %2258 = vmatprep.subr.mxu1 %v3175_v24  ;;  %2232 = vmatpush3.msra.mxu0 %v3909_v5 }
  0xee   :  { %1723 = vmatprep.mubr.f32.mxu0 %v3910_v13  ;;  %2259 = vmatpush3.msra.mxu1 %v3911_v45 }
  0xef   :  { %1725 = vmatmul.mubr.f32.vlgmr.msra.gmra.mxu0 %v3912_v28  ;;  %2260 = vmatprep.subr.mxu1 %v3231_v6 }
  0xf0   :  { %1827 = vmatprep.mubr.f32.mxu1 %v3910_v13  ;;  %2261 = vmatpush3.msra.mxu1 %v3216_v26 }
  0xf1   :  { %2262 = vmatprep.subr.mxu1 %v3872_v49 }
  0xf2   :  { %2263 = vmatpush3.msra.mxu1 %v3254_v1 }
  0xf3   :  { %2264 = vmatprep.subr.mxu1 %v3275_v16 }
  0xf4   :  { %2265 = vmatpush3.msra.mxu1 %v3297_v42 }
  0xf5   :  { %2266 = vmatprep.subr.mxu1 %v3304_v3 }
  0xf6   :  { %2267 = vmatpush3.msra.mxu1 %v3311_v47 }
  0xf7   :  { %1829 = vmatmul.mubr.f32.vlgmr.msra.gmra.mxu1 %v3912_v28 }
 0x107   :  { %v1883_v24 = vpop.f32.mrf.mxu0 }
 0x109   :  { %v1884_v6 = vpop.f32.mrf.mxu0 }
 0x10a   :  { %v1885_v36 = vadd.f32 %v1884_v6, %v1883_v24 }
 0x10d   :  { %v1918_v8 = vpop.f32.mrf.mxu1 }
 0x10f   :  { %v1919_v14 = vpop.f32.mrf.mxu1 }
 0x110   :  { %v1920_v61 = vadd.f32 %v1919_v14, %v1918_v8 }
 0x112   :  { %v451_v63 = vadd.f32 %v1920_v61, %v1885_v36 }
 0x127   :  { %v1953_v4 = vpop.f32.mrf.mxu0 }
 0x129   :  { %v1954_v26 = vpop.f32.mrf.mxu0 }
 0x12a   :  { %v1955_v3 = vadd.f32 %v1954_v26, %v1953_v4 }
 0x12c   :  { %v589_v30 = vadd.f32 %v1955_v3, %v451_v63 }
 0x12f   :  { %v1988_v9 = vpop.f32.mrf.mxu1 }
 0x131   :  { %v1989_v39 = vpop.f32.mrf.mxu1 }
 0x132   :  { %v1990_v46 = vadd.f32 %v1989_v39, %v1988_v9 }
 0x134   :  { %v697_v33 = vadd.f32 %v1990_v46, %v589_v30 }
 0x148   :  { %v2023_v49 = vpop.f32.mrf.mxu0 }
 0x14a   :  { %v2024_v1 = vpop.f32.mrf.mxu0 }
 0x14b   :  { %v2025_v44 = vadd.f32 %v2024_v1, %v2023_v49 }
 0x14d   :  { %v865_v31 = vadd.f32 %v2025_v44, %v697_v33 }
 0x151   :  { %v2058_v52 = vpop.f32.mrf.mxu1 }
 0x153   :  { %v2059_v42 = vpop.f32.mrf.mxu1 }
 0x154   :  { %v2060_v2 = vadd.f32 %v2059_v42, %v2058_v52 }
 0x156   :  { %v969_v56 = vadd.f32 %v2060_v2, %v865_v31 }
 0x16b   :  { %v2093_v16 = vpop.f32.mrf.mxu0 }
 0x16d   :  { %v2094_v23 = vpop.f32.mrf.mxu0 }
 0x16e   :  { %v2095_v60 = vadd.f32 %v2094_v23, %v2093_v16 }
 0x170   :  { %v1081_v59 = vadd.f32 %v2095_v60, %v969_v56 }
 0x174   :  { %v2128_v47 = vpop.f32.mrf.mxu1 }
 0x176   :  { %v2129_v21 = vpop.f32.mrf.mxu1 }
 0x177   :  { %v2130_v50 = vadd.f32 %v2129_v21, %v2128_v47 }
 0x179   :  { %v1313_v11 = vadd.f32 %v2130_v50, %v1081_v59 }
 0x18d   :  { %v2163_v19 = vpop.f32.mrf.mxu0 }
 0x18f   :  { %v2164_v7 = vpop.f32.mrf.mxu0 }
 0x190   :  { %v2165_v53 = vadd.f32 %v2164_v7, %v2163_v19 }
 0x192   :  { %v1451_v20 = vadd.f32 %v2165_v53, %v1313_v11 }
 0x196   :  { %v2198_v17 = vpop.f32.mrf.mxu1 }
 0x198   :  { %v2199_v12 = vpop.f32.mrf.mxu1 }
 0x199   :  { %v2200_v48 = vadd.f32 %v2199_v12, %v2198_v17 }
 0x19b   :  { %v1559_v18 = vadd.f32 %v2200_v48, %v1451_v20 }
 0x1af   :  { %v2233_v29 = vpop.f32.mrf.mxu0 }
 0x1b1   :  { %v2234_v10 = vpop.f32.mrf.mxu0 }
 0x1b2   :  { %v2235_v15 = vadd.f32 %v2234_v10, %v2233_v29 }
 0x1b4   :  { %v1727_v62 = vadd.f32 %v2235_v15, %v1559_v18 }
 0x1b7   :  { %v2268_v37 = vpop.f32.mrf.mxu1 }
 0x1b9   :  { %v2269_v27 = vpop.f32.mrf.mxu1 }
 0x1ba   :  { %v2270_v34 = vadd.f32 %v2269_v27, %v2268_v37 }
 0x1bc   :  { %v1831_v32 = vadd.f32 %v2270_v34, %v1727_v62 }
 0x1be   :  { %1834 = vst [vmem:[#allocation7] sm:$0xf] %v1831_v32 }
 0x1bf   :  { %2329 = shalt.err (!%p2326_p0)
}
 0x1c0   :  { %1844 = dma.vmem_to_hbm [thread:$0]  %s1842_s1, 64, %s3562_s2, [#allocation4]  }
 0x1c1   :  { %2342 = dma.done.wait [#allocation4], 64  }
 0x1c2   :  { %2343 = vsyncadd [#allocation4], 4294967232 }
 0x1c3   :  { %1848 = vsyncpa [#allocation3], 1 }
 0x1c4   :  { %1849 = vsyncpa [#allocation6], 1 }
 0x1c5   :  { %1850 = vsyncpa [#allocation4], 1 }

</bundles_post_ra>
